<compile_context>
chip_gen: v7x
topology: tpu7x:2x2x1
jax: 0.10.0
libtpu: 0.0.40
codegen_flags: <defaults>
</compile_context>

<pallas_src>
import jax
import jax.numpy as jnp
from jax.experimental import pallas as pl
from jax.experimental.pallas import tpu as pltpu


TK = 512     # C_in (reduction) tile  -> 2 pipelined K steps
TCO = 128    # C_out tile             -> 2 "parallel" blocks for v7x's two TensorCores


def add_relu_conv1x1_kernel(a_ref, b_ref, w_ref, o_ref, acc_ref):
    # a_ref, b_ref: (TK, HW) f32    w_ref: (TCO, TK) f32
    # o_ref: (TCO, HW) f32          acc_ref: (TCO, HW) f32 scratch (persists across K axis)
    k = pl.program_id(2)

    @pl.when(k == 0)
    def _init():
        acc_ref[...] = jnp.zeros_like(acc_ref)

    # Fused add + ReLU in f32 on the VPU, then bf16 operands into the MXU with f32 accumulation.
    x = jnp.maximum(a_ref[...] + b_ref[...], 0.0)
    acc_ref[...] += jnp.dot(
        w_ref[...].astype(jnp.bfloat16),
        x.astype(jnp.bfloat16),
        preferred_element_type=jnp.float32,
    )

    @pl.when(k == pl.num_programs(2) - 1)
    def _store():
        o_ref[...] = acc_ref[...].astype(o_ref.dtype)


def fused_add_relu_conv1x1(x438, x430, weight):
    """x438, x430: [N, C_in, H, W] f32.  weight: [C_out, C_in, 1, 1] f32.  Returns [N, C_out, H, W]."""
    N, C_in, H, W = x438.shape
    C_out = weight.shape[0]
    HW = H * W

    assert C_in % TK == 0 and C_out % TCO == 0

    # Free (contiguous) views -- no transposes, no copies in the wrapper.
    a = x438.reshape(N, C_in, HW)
    b = x430.reshape(N, C_in, HW)
    w = weight.reshape(C_out, C_in)

    n_j = C_out // TCO
    n_k = C_in // TK

    cost = pl.CostEstimate(
        flops=2 * N * C_out * C_in * HW + 2 * N * C_in * HW,     # matmul + add/relu
        transcendentals=0,
        bytes_accessed=4 * (2 * N * C_in * HW + C_out * C_in + N * C_out * HW),
    )

    out_flat = pl.pallas_call(
        add_relu_conv1x1_kernel,
        out_shape=jax.ShapeDtypeStruct((N, C_out, HW), jnp.float32),
        grid_spec=pltpu.PrefetchScalarGridSpec(
            num_scalar_prefetch=0,
            grid=(N, n_j, n_k),          # (batch, C_out blocks, C_in reduction blocks)
            in_specs=[
                pl.BlockSpec((None, TK, HW), lambda n, j, k: (n, k, 0)),   # x438 chunk
                pl.BlockSpec((None, TK, HW), lambda n, j, k: (n, k, 0)),   # x430 chunk
                pl.BlockSpec((TCO, TK), lambda n, j, k: (j, k)),           # weight chunk
            ],
            out_specs=pl.BlockSpec((None, TCO, HW), lambda n, j, k: (n, j, 0)),
            scratch_shapes=[pltpu.VMEM((TCO, HW), jnp.float32)],
        ),
        compiler_params=pltpu.CompilerParams(
            dimension_semantics=("parallel", "parallel", "arbitrary"),
        ),
        cost_estimate=cost,
    )(a, b, w)

    # Free view back to NCHW.
    return out_flat.reshape(N, C_out, H, W)


if __name__ == "__main__":
    key = jax.random.PRNGKey(0)
    k1, k2, k3 = jax.random.split(key, 3)

    # Shapes implied by the module: inputs [1, 1024, 14, 14], Conv2d(1024 -> 256, 1x1, bias=False).
    N, C_in, H, W, C_out = 1, 1024, 14, 14, 256
    x438 = jax.random.normal(k1, (N, C_in, H, W), dtype=jnp.float32)
    x430 = jax.random.normal(k2, (N, C_in, H, W), dtype=jnp.float32)
    weight = jax.random.normal(k3, (C_out, C_in, 1, 1), dtype=jnp.float32) * 0.02

    out = jax.block_until_ready(fused_add_relu_conv1x1(x438, x430, weight))

    # Pure-JAX f32 reference of the same computation.
    x = jnp.maximum(x438 + x430, 0.0)
    ref = jnp.einsum("nchw,oc->nohw", x, weight.reshape(C_out, C_in))
    assert out.shape == (N, C_out, H, W)
    # bf16 MXU inputs with f32 accumulation -> slightly looser tolerance (per review).
    assert jnp.allclose(out, ref, atol=2e-2, rtol=2e-2), float(jnp.max(jnp.abs(out - ref)))

    print("KERNEL_OK")
</pallas_src>

<mosaic_0001>
module attributes {stable_mosaic.version = 11 : i64} {
  func.func @add_relu_conv1x1_kernel(%arg0: i32, %arg1: i32, %arg2: i32, %arg3: memref<1x512x196xf32, #tpu.memory_space<vmem>>, %arg4: memref<1x512x196xf32, #tpu.memory_space<vmem>>, %arg5: memref<128x512xf32, #tpu.memory_space<vmem>>, %arg6: memref<1x128x196xf32, #tpu.memory_space<vmem>>, %arg7: memref<128x196xf32, #tpu.memory_space<vmem>>) attributes {dimension_semantics = [#tpu.dimension_semantics<parallel>, #tpu.dimension_semantics<parallel>, #tpu.dimension_semantics<arbitrary>], iteration_bounds = array<i64: 1, 2, 2>, scalar_prefetch = 0 : i64, scratch_operands = 1 : i64, tpu.core_type = #tpu.core_type<tc>, window_params = [{transform_indices = @transform_0, window_bounds = array<i64: 1, 512, 196>}, {transform_indices = @transform_1, window_bounds = array<i64: 1, 512, 196>}, {transform_indices = @transform_2, window_bounds = array<i64: 128, 512>}, {transform_indices = @transform_3, window_bounds = array<i64: 1, 128, 196>}]} {
    %c0_i32 = arith.constant 0 : i32
    %0 = arith.cmpi eq, %arg2, %c0_i32 : i32
    %1 = arith.extui %0 : i1 to i32
    %c0_i32_0 = arith.constant 0 : i32
    %2 = arith.cmpi ne, %1, %c0_i32_0 : i32
    scf.if %2 {
      %cst_14 = arith.constant 0.000000e+00 : f32
      %20 = vector.broadcast %cst_14 : f32 to vector<128x196xf32>
      %c0_15 = arith.constant 0 : index
      %c0_16 = arith.constant 0 : index
      %21 = vector.load %arg7[%c0_15, %c0_16] : memref<128x196xf32, #tpu.memory_space<vmem>>, vector<128x196xf32>
      tpu.vector_store %arg7[%c0_15, %c0_16], %20 {strides = array<i32>} : memref<128x196xf32, #tpu.memory_space<vmem>>, vector<128x196xf32>,
    } else {
    }
    %c0 = arith.constant 0 : index
    %c0_1 = arith.constant 0 : index
    %c0_2 = arith.constant 0 : index
    %3 = vector.load %arg3[%c0, %c0_1, %c0_2] : memref<1x512x196xf32, #tpu.memory_space<vmem>>, vector<1x512x196xf32>
    %4 = vector.shape_cast %3 : vector<1x512x196xf32> to vector<512x196xf32>
    %c0_3 = arith.constant 0 : index
    %c0_4 = arith.constant 0 : index
    %c0_5 = arith.constant 0 : index
    %5 = vector.load %arg4[%c0_3, %c0_4, %c0_5] : memref<1x512x196xf32, #tpu.memory_space<vmem>>, vector<1x512x196xf32>
    %6 = vector.shape_cast %5 : vector<1x512x196xf32> to vector<512x196xf32>
    %7 = arith.addf %4, %6 : vector<512x196xf32>
    %cst = arith.constant 0.000000e+00 : f32
    %8 = vector.broadcast %cst : f32 to vector<512x196xf32>
    %9 = arith.maximumf %7, %8 : vector<512x196xf32>
    %c0_6 = arith.constant 0 : index
    %c0_7 = arith.constant 0 : index
    %10 = vector.load %arg7[%c0_6, %c0_7] : memref<128x196xf32, #tpu.memory_space<vmem>>, vector<128x196xf32>
    %c0_8 = arith.constant 0 : index
    %c0_9 = arith.constant 0 : index
    %11 = vector.load %arg5[%c0_8, %c0_9] : memref<128x512xf32, #tpu.memory_space<vmem>>, vector<128x512xf32>
    %12 = arith.truncf %11 : vector<128x512xf32> to vector<128x512xbf16>
    %13 = arith.truncf %9 : vector<512x196xf32> to vector<512x196xbf16>
    %cst_10 = arith.constant dense<0.000000e+00> : vector<128x196xf32>
    %14 = tpu.matmul %12, %13, %cst_10 {dimension_numbers = #tpu.dot_dimension_numbers<[1], [0], [0], [1], [0, 0, 1, 1], [], []>} : vector<128x512xbf16>, vector<512x196xbf16>, vector<128x196xf32> -> vector<128x196xf32>
    %15 = arith.addf %10, %14 : vector<128x196xf32>
    %c0_11 = arith.constant 0 : index
    %c0_12 = arith.constant 0 : index
    %16 = vector.load %arg7[%c0_11, %c0_12] : memref<128x196xf32, #tpu.memory_space<vmem>>, vector<128x196xf32>
    tpu.vector_store %arg7[%c0_11, %c0_12], %15 {strides = array<i32>} : memref<128x196xf32, #tpu.memory_space<vmem>>, vector<128x196xf32>,
    %c1_i32 = arith.constant 1 : i32
    %17 = arith.cmpi eq, %arg2, %c1_i32 : i32
    %18 = arith.extui %17 : i1 to i32
    %c0_i32_13 = arith.constant 0 : i32
    %19 = arith.cmpi ne, %18, %c0_i32_13 : i32
    scf.if %19 {
      %c0_14 = arith.constant 0 : index
      %c0_15 = arith.constant 0 : index
      %20 = vector.load %arg7[%c0_14, %c0_15] : memref<128x196xf32, #tpu.memory_space<vmem>>, vector<128x196xf32>
      %c0_16 = arith.constant 0 : index
      %c0_17 = arith.constant 0 : index
      %c0_18 = arith.constant 0 : index
      %21 = vector.load %arg6[%c0_16, %c0_17, %c0_18] : memref<1x128x196xf32, #tpu.memory_space<vmem>>, vector<1x128x196xf32>
      %22 = vector.shape_cast %21 : vector<1x128x196xf32> to vector<128x196xf32>
      %23 = vector.shape_cast %20 : vector<128x196xf32> to vector<1x128x196xf32>
      tpu.vector_store %arg6[%c0_16, %c0_17, %c0_18], %23 {strides = array<i32>} : memref<1x128x196xf32, #tpu.memory_space<vmem>>, vector<1x128x196xf32>,
    } else {
    }
    return
  }
  func.func @transform_0(%arg0: i32, %arg1: i32, %arg2: i32) -> (i32, i32, i32) {
    %c0_i32 = arith.constant 0 : i32
    %c0_i32_0 = arith.constant 0 : i32
    return %arg0, %arg2, %c0_i32 : i32, i32, i32
  }
  func.func @transform_1(%arg0: i32, %arg1: i32, %arg2: i32) -> (i32, i32, i32) {
    %c0_i32 = arith.constant 0 : i32
    %c0_i32_0 = arith.constant 0 : i32
    return %arg0, %arg2, %c0_i32 : i32, i32, i32
  }
  func.func @transform_2(%arg0: i32, %arg1: i32, %arg2: i32) -> (i32, i32) {
    %c0_i32 = arith.constant 0 : i32
    return %arg1, %arg2 : i32, i32
  }
  func.func @transform_3(%arg0: i32, %arg1: i32, %arg2: i32) -> (i32, i32, i32) {
    %c0_i32 = arith.constant 0 : i32
    %c0_i32_0 = arith.constant 0 : i32
    return %arg0, %arg1, %c0_i32 : i32, i32, i32
  }
}

</mosaic_0001>

<bundles_post_ra>
// kernel: tpu_custom_call.1
= control target key start
LH: loop header
LB: loop body
LE: loop exit
PB: predicated region body
PF: predicated region fallthrough
CT: control target
= control target key end

     0   :  { %s1872_s12 = smov 0   ;;  %s1874_s13 = smov 0   ;;  %s2509_s0 = inlined_call_operand.vmem [shape: f32[1,1024,196], index: 0, kind: input, shape index: {}]   ;;  %s2510_s1 = inlined_call_operand.vmem [shape: f32[1,1024,196], index: 1, kind: input, shape index: {}]   ;;  %s2511_s2 = inlined_call_operand.vmem [shape: f32[256,1024], index: 2, kind: input, shape index: {}]   ;;  %s2512_s3 = inlined_call_operand.vmem [shape: f32[1,256,196], index: 3, kind: output, shape index: {}]  }
   0x1   :  { %s1876_s14 = smov 0   ;;  %s1878_s15 = smov 0  }
   0x2   :  { %s1880_s16 = smov 0   ;;  %s1882_s17 = smov 0  }
   0x3   :  { %s1884_s18 = smov 0  }
   0x4 LB: > { %s25_s19 = sadd.s32 1, %s1841_s16  ;;  %s28_s20 = sadd.s32 1, %s1845_s17  ;;  %s1849_s18 = sphi %s1884_s18, %s13_s18   ;;  %s1845_s17 = sphi %s1882_s17, %s2518_s17   ;;  %s1841_s16 = sphi %s1880_s16, %s2517_s16   ;;  %s1837_s15 = sphi %s1878_s15, %s2516_s15   ;;  %s1833_s14 = sphi %s1876_s14, %s2515_s14   ;;  %s1829_s13 = sphi %s1874_s13, %s2514_s13   ;;  %s1825_s12 = sphi %s1872_s12, %s2513_s12  }
   0x5   : > { %p26_p0 = scmp.ge.s32.totalorder %s25_s19, 2  ;;  %p104_p1 = scmp.ne.s32.totalorder %s1829_s13, %s1825_s12 }
   0x6   : > { %p105_p2 = scmp.eq.s32.totalorder %s1849_s18, 0  ;;  %s97_s24 = sadd.s32 1, %s1829_s13 }
   0x7   : > { %s2520_s19 = smov (%p26_p0, %s25_s19), 0  ;;  %s2522_s20 = smov (!%p26_p0, %s28_s20), %s1845_s17 }
   0x8   : > { %p106_p3 = por %p105_p2, %p104_p1  ;;  %p30_p4 = scmp.ge.s32.totalorder %s2522_s20, 2 }
   0x9   : > { %s93_s21 = ssub.s32 %s1841_s16, %s2520_s19  ;;  %p1681_p6 = scmp.ge.s32.totalorder %s1849_s18, 4 }
   0xa   : > { %s2524_s20 = smov (%p30_p4, %s2522_s20), 0 }
   0xb   : > { %s92_s22 = ssub.s32 %s1845_s17, %s2524_s20  ;;  %158 = sbr.rel (%p1681_p6) target bundleno = 57 (0x39), region = 16 }
   0xc   : > { %s94_s23 = sor.u32 %s93_s21, %s92_s22 }
   0xd   : > { %p95_p5 = scmp.eq.s32.totalorder %s94_s23, 0 }
   0xf   : > { %s1923_s25 = scalar_select %p95_p5, %s1829_s13, %s97_s24  }
  0x12   : > { %189 = sbr.rel (!%p106_p3) target bundleno = 57 (0x39), region = 28  ;;  %s191_s26 = sand.u32 (%p106_p3), 1, %s1829_s13  }
  0x13   : > { %s1684_s27 = sshll.u32 (%p106_p3), %s1841_s16, 2  ;;  %s1682_s28 = sshll.u32 (%p106_p3), %s191_s26, 9 }
  0x14   : > { %s1702_s29 = sshll.u32 (%p106_p3), %s1845_s17, 7  ;;  %s1937_s8 = scalar_lea.vmem (%p106_p3), [#allocation3], %s1682_s28 }
  0x15   : > { %s197_s30 = sadd.s32 (%p106_p3), %s1702_s29, %s1684_s27 }
  0x16   : > { %s1686_s4 = sshll.u32 (%p106_p3), %s197_s30, 3 }
  0x17   : > { %s1932_s7 = scalar_lea.vmem (%p106_p3), %s2511_s2, %s1686_s4 }
  0x18   : > { %v212_v0 = vld [vmem:[%s1932_s7] sm:$0xff] (%p106_p3)  ;;  %v214_v1 = vld [vmem:[%s1932_s7 + $0x8] sm:$0xff] (%p106_p3)  ;;  %v216_v2 = vld [vmem:[%s1932_s7 + $0x10] sm:$0xff] (%p106_p3) }
  0x19   : > { %213 = vst [vmem:[%s1937_s8] sm:$0xff] %v212_v0  ;;  %215 = vst [vmem:[%s1937_s8 + $0x8] sm:$0xff] %v214_v1  ;;  %v218_v3 = vld [vmem:[%s1932_s7 + $0x18] sm:$0xff]  ;;  %v220_v4 = vld [vmem:[%s1932_s7 + $0x40] sm:$0xff] }
  0x1a   : > { %217 = vst [vmem:[%s1937_s8 + $0x10] sm:$0xff] %v216_v2  ;;  %v222_v5 = vld [vmem:[%s1932_s7 + $0x48] sm:$0xff]  ;;  %219 = vst [vmem:[%s1937_s8 + $0x18] sm:$0xff] %v218_v3  ;;  %v224_v6 = vld [vmem:[%s1932_s7 + $0x50] sm:$0xff] }
  0x1b   : > { %221 = vst [vmem:[%s1937_s8 + $0x20] sm:$0xff] %v220_v4  ;;  %223 = vst [vmem:[%s1937_s8 + $0x28] sm:$0xff] %v222_v5  ;;  %v226_v7 = vld [vmem:[%s1932_s7 + $0x58] sm:$0xff]  ;;  %v228_v8 = vld [vmem:[%s1932_s7 + $0x80] sm:$0xff] }
  0x1c   : > { %225 = vst [vmem:[%s1937_s8 + $0x30] sm:$0xff] %v224_v6  ;;  %227 = vst [vmem:[%s1937_s8 + $0x38] sm:$0xff] %v226_v7  ;;  %v230_v9 = vld [vmem:[%s1932_s7 + $0x88] sm:$0xff]  ;;  %v232_v10 = vld [vmem:[%s1932_s7 + $0x90] sm:$0xff] }
  0x1d   : > { %229 = vst [vmem:[%s1937_s8 + $0x40] sm:$0xff] %v228_v8  ;;  %v234_v11 = vld [vmem:[%s1932_s7 + $0x98] sm:$0xff]  ;;  %231 = vst [vmem:[%s1937_s8 + $0x48] sm:$0xff] %v230_v9  ;;  %v236_v12 = vld [vmem:[%s1932_s7 + $0xc0] sm:$0xff] }
  0x1e   : > { %233 = vst [vmem:[%s1937_s8 + $0x50] sm:$0xff] %v232_v10  ;;  %235 = vst [vmem:[%s1937_s8 + $0x58] sm:$0xff] %v234_v11  ;;  %v238_v13 = vld [vmem:[%s1932_s7 + $0xc8] sm:$0xff]  ;;  %v240_v14 = vld [vmem:[%s1932_s7 + $0xd0] sm:$0xff] }
  0x1f   : > { %237 = vst [vmem:[%s1937_s8 + $0x60] sm:$0xff] %v236_v12  ;;  %239 = vst [vmem:[%s1937_s8 + $0x68] sm:$0xff] %v238_v13  ;;  %v242_v15 = vld [vmem:[%s1932_s7 + $0xd8] sm:$0xff]  ;;  %v244_v16 = vld [vmem:[%s1932_s7 + $0x100] sm:$0xff] }
  0x20   : > { %241 = vst [vmem:[%s1937_s8 + $0x70] sm:$0xff] %v240_v14  ;;  %v246_v17 = vld [vmem:[%s1932_s7 + $0x108] sm:$0xff]  ;;  %243 = vst [vmem:[%s1937_s8 + $0x78] sm:$0xff] %v242_v15  ;;  %v248_v18 = vld [vmem:[%s1932_s7 + $0x110] sm:$0xff] }
  0x21   : > { %245 = vst [vmem:[%s1937_s8 + $0x80] sm:$0xff] %v244_v16  ;;  %247 = vst [vmem:[%s1937_s8 + $0x88] sm:$0xff] %v246_v17  ;;  %v250_v19 = vld [vmem:[%s1932_s7 + $0x118] sm:$0xff]  ;;  %v252_v20 = vld [vmem:[%s1932_s7 + $0x140] sm:$0xff] }
  0x22   : > { %249 = vst [vmem:[%s1937_s8 + $0x90] sm:$0xff] %v248_v18  ;;  %251 = vst [vmem:[%s1937_s8 + $0x98] sm:$0xff] %v250_v19  ;;  %v254_v21 = vld [vmem:[%s1932_s7 + $0x148] sm:$0xff]  ;;  %v256_v22 = vld [vmem:[%s1932_s7 + $0x150] sm:$0xff] }
  0x23   : > { %253 = vst [vmem:[%s1937_s8 + $0xa0] sm:$0xff] %v252_v20  ;;  %v258_v23 = vld [vmem:[%s1932_s7 + $0x158] sm:$0xff]  ;;  %255 = vst [vmem:[%s1937_s8 + $0xa8] sm:$0xff] %v254_v21  ;;  %v260_v24 = vld [vmem:[%s1932_s7 + $0x180] sm:$0xff] }
  0x24   : > { %257 = vst [vmem:[%s1937_s8 + $0xb0] sm:$0xff] %v256_v22  ;;  %259 = vst [vmem:[%s1937_s8 + $0xb8] sm:$0xff] %v258_v23  ;;  %v262_v25 = vld [vmem:[%s1932_s7 + $0x188] sm:$0xff]  ;;  %v264_v26 = vld [vmem:[%s1932_s7 + $0x190] sm:$0xff] }
  0x25   : > { %261 = vst [vmem:[%s1937_s8 + $0xc0] sm:$0xff] %v260_v24  ;;  %263 = vst [vmem:[%s1937_s8 + $0xc8] sm:$0xff] %v262_v25  ;;  %v266_v27 = vld [vmem:[%s1932_s7 + $0x198] sm:$0xff]  ;;  %v268_v28 = vld [vmem:[%s1932_s7 + $0x1c0] sm:$0xff] }
  0x26   : > { %265 = vst [vmem:[%s1937_s8 + $0xd0] sm:$0xff] %v264_v26  ;;  %v270_v29 = vld [vmem:[%s1932_s7 + $0x1c8] sm:$0xff]  ;;  %267 = vst [vmem:[%s1937_s8 + $0xd8] sm:$0xff] %v266_v27  ;;  %v272_v30 = vld [vmem:[%s1932_s7 + $0x1d0] sm:$0xff] }
  0x27   : > { %269 = vst [vmem:[%s1937_s8 + $0xe0] sm:$0xff] %v268_v28  ;;  %271 = vst [vmem:[%s1937_s8 + $0xe8] sm:$0xff] %v270_v29  ;;  %v274_v31 = vld [vmem:[%s1932_s7 + $0x1d8] sm:$0xff]  ;;  %v276_v32 = vld [vmem:[%s1932_s7 + $0x200] sm:$0xff] }
  0x28   : > { %273 = vst [vmem:[%s1937_s8 + $0xf0] sm:$0xff] %v272_v30  ;;  %275 = vst [vmem:[%s1937_s8 + $0xf8] sm:$0xff] %v274_v31  ;;  %v278_v33 = vld [vmem:[%s1932_s7 + $0x208] sm:$0xff]  ;;  %v280_v34 = vld [vmem:[%s1932_s7 + $0x210] sm:$0xff] }
  0x29   : > { %277 = vst [vmem:[%s1937_s8 + $0x100] sm:$0xff] %v276_v32  ;;  %v282_v35 = vld [vmem:[%s1932_s7 + $0x218] sm:$0xff]  ;;  %279 = vst [vmem:[%s1937_s8 + $0x108] sm:$0xff] %v278_v33  ;;  %v284_v36 = vld [vmem:[%s1932_s7 + $0x240] sm:$0xff] }
  0x2a   : > { %281 = vst [vmem:[%s1937_s8 + $0x110] sm:$0xff] %v280_v34  ;;  %283 = vst [vmem:[%s1937_s8 + $0x118] sm:$0xff] %v282_v35  ;;  %v286_v37 = vld [vmem:[%s1932_s7 + $0x248] sm:$0xff]  ;;  %v288_v38 = vld [vmem:[%s1932_s7 + $0x250] sm:$0xff] }
  0x2b   : > { %285 = vst [vmem:[%s1937_s8 + $0x120] sm:$0xff] %v284_v36  ;;  %287 = vst [vmem:[%s1937_s8 + $0x128] sm:$0xff] %v286_v37  ;;  %v290_v39 = vld [vmem:[%s1932_s7 + $0x258] sm:$0xff]  ;;  %v292_v40 = vld [vmem:[%s1932_s7 + $0x280] sm:$0xff] }
  0x2c   : > { %289 = vst [vmem:[%s1937_s8 + $0x130] sm:$0xff] %v288_v38  ;;  %v294_v41 = vld [vmem:[%s1932_s7 + $0x288] sm:$0xff]  ;;  %291 = vst [vmem:[%s1937_s8 + $0x138] sm:$0xff] %v290_v39  ;;  %v296_v42 = vld [vmem:[%s1932_s7 + $0x290] sm:$0xff] }
  0x2d   : > { %293 = vst [vmem:[%s1937_s8 + $0x140] sm:$0xff] %v292_v40  ;;  %295 = vst [vmem:[%s1937_s8 + $0x148] sm:$0xff] %v294_v41  ;;  %v298_v43 = vld [vmem:[%s1932_s7 + $0x298] sm:$0xff]  ;;  %v300_v44 = vld [vmem:[%s1932_s7 + $0x2c0] sm:$0xff] }
  0x2e   : > { %297 = vst [vmem:[%s1937_s8 + $0x150] sm:$0xff] %v296_v42  ;;  %299 = vst [vmem:[%s1937_s8 + $0x158] sm:$0xff] %v298_v43  ;;  %v302_v45 = vld [vmem:[%s1932_s7 + $0x2c8] sm:$0xff]  ;;  %v304_v46 = vld [vmem:[%s1932_s7 + $0x2d0] sm:$0xff] }
  0x2f   : > { %301 = vst [vmem:[%s1937_s8 + $0x160] sm:$0xff] %v300_v44  ;;  %v306_v47 = vld [vmem:[%s1932_s7 + $0x2d8] sm:$0xff]  ;;  %303 = vst [vmem:[%s1937_s8 + $0x168] sm:$0xff] %v302_v45  ;;  %v308_v48 = vld [vmem:[%s1932_s7 + $0x300] sm:$0xff] }
  0x30   : > { %305 = vst [vmem:[%s1937_s8 + $0x170] sm:$0xff] %v304_v46  ;;  %307 = vst [vmem:[%s1937_s8 + $0x178] sm:$0xff] %v306_v47  ;;  %v310_v49 = vld [vmem:[%s1932_s7 + $0x308] sm:$0xff]  ;;  %v312_v50 = vld [vmem:[%s1932_s7 + $0x310] sm:$0xff] }
  0x31   : > { %309 = vst [vmem:[%s1937_s8 + $0x180] sm:$0xff] %v308_v48  ;;  %311 = vst [vmem:[%s1937_s8 + $0x188] sm:$0xff] %v310_v49  ;;  %v314_v51 = vld [vmem:[%s1932_s7 + $0x318] sm:$0xff]  ;;  %v316_v52 = vld [vmem:[%s1932_s7 + $0x340] sm:$0xff] }
  0x32   : > { %313 = vst [vmem:[%s1937_s8 + $0x190] sm:$0xff] %v312_v50  ;;  %v318_v53 = vld [vmem:[%s1932_s7 + $0x348] sm:$0xff]  ;;  %315 = vst [vmem:[%s1937_s8 + $0x198] sm:$0xff] %v314_v51  ;;  %v320_v54 = vld [vmem:[%s1932_s7 + $0x350] sm:$0xff] }
  0x33   : > { %317 = vst [vmem:[%s1937_s8 + $0x1a0] sm:$0xff] %v316_v52  ;;  %319 = vst [vmem:[%s1937_s8 + $0x1a8] sm:$0xff] %v318_v53  ;;  %v322_v55 = vld [vmem:[%s1932_s7 + $0x358] sm:$0xff]  ;;  %v324_v56 = vld [vmem:[%s1932_s7 + $0x380] sm:$0xff] }
  0x34   : > { %321 = vst [vmem:[%s1937_s8 + $0x1b0] sm:$0xff] %v320_v54  ;;  %323 = vst [vmem:[%s1937_s8 + $0x1b8] sm:$0xff] %v322_v55  ;;  %v326_v57 = vld [vmem:[%s1932_s7 + $0x388] sm:$0xff]  ;;  %v328_v58 = vld [vmem:[%s1932_s7 + $0x390] sm:$0xff] }
  0x35   : > { %325 = vst [vmem:[%s1937_s8 + $0x1c0] sm:$0xff] %v324_v56  ;;  %v330_v59 = vld [vmem:[%s1932_s7 + $0x398] sm:$0xff]  ;;  %327 = vst [vmem:[%s1937_s8 + $0x1c8] sm:$0xff] %v326_v57  ;;  %v332_v60 = vld [vmem:[%s1932_s7 + $0x3c0] sm:$0xff] }
  0x36   : > { %329 = vst [vmem:[%s1937_s8 + $0x1d0] sm:$0xff] %v328_v58  ;;  %331 = vst [vmem:[%s1937_s8 + $0x1d8] sm:$0xff] %v330_v59  ;;  %v334_v61 = vld [vmem:[%s1932_s7 + $0x3c8] sm:$0xff]  ;;  %v336_v62 = vld [vmem:[%s1932_s7 + $0x3d0] sm:$0xff] }
  0x37   : > { %333 = vst [vmem:[%s1937_s8 + $0x1e0] sm:$0xff] %v332_v60  ;;  %335 = vst [vmem:[%s1937_s8 + $0x1e8] sm:$0xff] %v334_v61  ;;  %v338_v63 = vld [vmem:[%s1932_s7 + $0x3d8] sm:$0xff] }
  0x38   : > { %337 = vst [vmem:[%s1937_s8 + $0x1f0] sm:$0xff] %v336_v62  ;;  %339 = vst [vmem:[%s1937_s8 + $0x1f8] sm:$0xff] %v338_v63 }
  0x39 PF: > { %p1687_p7 = scmp.ge.s32.totalorder %s1849_s18, 1  ;;  %p344_p8 = scmp.lt.s32.totalorder %s1849_s18, 5 }
  0x3b   : > { %p345_p9 = pnand %p1687_p7, %p344_p8 }
  0x3c   : > { %s351_s9 = sand.u32 (!%p345_p9), 1, %s1825_s12   ;;  %s1689_s10 = sshll.u32 (!%p345_p9), %s1833_s14, 6 }
  0x3d   : > { %348 = sbr.rel (%p345_p9) target bundleno = 465 (0x1d1), region = 51  ;;  %s1688_s11 = sshll.u32 (!%p345_p9), %s351_s9, 9 }
  0x3e   : > { %p402_p10 = scmp.lt.s32.totalorder (!%p345_p9), %s1689_s10, 127  ;;  %s1695_s21 = sshll.u32 (!%p345_p9), %s1837_s15, 4 }
  0x3f   : > { %p426_p11 = scmp.lt.s32.totalorder (!%p345_p9), %s1695_s21, 31  ;;  %s2084_s15 = scalar_lea.vmem (!%p345_p9), [#allocation3], %s1688_s11 }
  0x40   : > { %p1698_p12 = scmp.ne.s32.totalorder (!%p345_p9), %s1833_s14, 0 }
  0x44   : > { %s2526_s10 = smov (!%p402_p10, %s1689_s10), 127  ;;  %s2528_s21 = smov (!%p426_p11, %s1695_s21), 31 }
  0x45   : > { %s1703_s22 = sshll.u32 %s2526_s10, 4  ;;  %s1705_s30 = sshll.u32 %s2528_s21, 4  ;;  %vm439_vm0 = vcmask (!%p1698_p12), 556032   ;;  %v1851_v0 = vmov (!%p1698_p12), 0.0  }
  0x46   : > { %s2072_s26 = scalar_lea.vmem %s2509_s0, %s1703_s22  ;;  %s2077_s29 = scalar_lea.vmem %s2510_s1, %s1703_s22  ;;  %438 = vst [vmem:[#allocation2] sm:$0xff] (!%p1698_p12), %v1851_v0  ;;  %441 = vst [vmem:[#allocation2 + $0x10] sm:$0xff] (!%p1698_p12), %v1851_v0 }
  0x47   : > { %s2082_s5 = scalar_lea.vmem %s2512_s3, %s1705_s30  ;;  %437 = sbr.rel (%p1698_p12) target bundleno = 86 (0x56), region = 59  ;;  %443 = vst [vmem:[#allocation2 + $0x20] sm:$0xff] (!%p1698_p12), %v1851_v0  ;;  %445 = vst [vmem:[#allocation2 + $0x30] sm:$0xff] (!%p1698_p12), %v1851_v0 }
  0x48   : > { %447 = vst [vmem:[#allocation2 + $0x40] sm:$0xff] (!%p1698_p12), %v1851_v0  ;;  %449 = vst [vmem:[#allocation2 + $0x50] sm:$0xff] (!%p1698_p12), %v1851_v0 }
  0x49   : > { %451 = vst [vmem:[#allocation2 + $0x60] sm:$0xff] (!%p1698_p12), %v1851_v0  ;;  %453 = vst [vmem:[#allocation2 + $0x70] sm:$0xff] (!%p1698_p12), %v1851_v0 }
  0x4a   : > { %455 = vst [vmem:[#allocation2 + $0x80] sm:$0xff] (!%p1698_p12), %v1851_v0  ;;  %457 = vst [vmem:[#allocation2 + $0x90] sm:$0xff] (!%p1698_p12), %v1851_v0 }
  0x4b   : > { %459 = vst [vmem:[#allocation2 + $0xa0] sm:$0xff] (!%p1698_p12), %v1851_v0  ;;  %461 = vst [vmem:[#allocation2 + $0xb0] sm:$0xff] (!%p1698_p12), %v1851_v0 }
  0x4c   : > { %463 = vst [vmem:[#allocation2 + $0xc0] sm:$0xff] (!%p1698_p12), %v1851_v0  ;;  %465 = vst [vmem:[#allocation2 + $0xd0] sm:$0xff] (!%p1698_p12), %v1851_v0 }
  0x4d   : > { %467 = vst [vmem:[#allocation2 + $0xe0] sm:$0xff] (!%p1698_p12), %v1851_v0  ;;  %469 = vst [vmem:[#allocation2 + $0xf0] sm:$0xff] (!%p1698_p12), %v1851_v0 }
  0x4e   : > { %440 = vst.msk [vmem:[#allocation2 + $0x8] sm:$0xff] %vm439_vm0, %v1851_v0  ;;  %442 = vst.msk [vmem:[#allocation2 + $0x18] sm:$0xff] %vm439_vm0, %v1851_v0 }
  0x4f   : > { %444 = vst.msk [vmem:[#allocation2 + $0x28] sm:$0xff] %vm439_vm0, %v1851_v0  ;;  %446 = vst.msk [vmem:[#allocation2 + $0x38] sm:$0xff] %vm439_vm0, %v1851_v0 }
  0x50   : > { %448 = vst.msk [vmem:[#allocation2 + $0x48] sm:$0xff] %vm439_vm0, %v1851_v0  ;;  %450 = vst.msk [vmem:[#allocation2 + $0x58] sm:$0xff] %vm439_vm0, %v1851_v0 }
  0x51   : > { %452 = vst.msk [vmem:[#allocation2 + $0x68] sm:$0xff] %vm439_vm0, %v1851_v0  ;;  %454 = vst.msk [vmem:[#allocation2 + $0x78] sm:$0xff] %vm439_vm0, %v1851_v0 }
  0x52   : > { %456 = vst.msk [vmem:[#allocation2 + $0x88] sm:$0xff] %vm439_vm0, %v1851_v0  ;;  %458 = vst.msk [vmem:[#allocation2 + $0x98] sm:$0xff] %vm439_vm0, %v1851_v0 }
  0x53   : > { %460 = vst.msk [vmem:[#allocation2 + $0xa8] sm:$0xff] %vm439_vm0, %v1851_v0  ;;  %462 = vst.msk [vmem:[#allocation2 + $0xb8] sm:$0xff] %vm439_vm0, %v1851_v0 }
  0x54   : > { %464 = vst.msk [vmem:[#allocation2 + $0xc8] sm:$0xff] %vm439_vm0, %v1851_v0  ;;  %466 = vst.msk [vmem:[#allocation2 + $0xd8] sm:$0xff] %vm439_vm0, %v1851_v0 }
  0x55   : > { %468 = vst.msk [vmem:[#allocation2 + $0xe8] sm:$0xff] %vm439_vm0, %v1851_v0  ;;  %470 = vst.msk [vmem:[#allocation2 + $0xf8] sm:$0xff] %vm439_vm0, %v1851_v0 }
  0x56 PF: > { %v472_v1 = vld [vmem:[%s2072_s26 + $0x8] sm:$0xff]  ;;  %v474_v2 = vld [vmem:[%s2072_s26 + $0x18] sm:$0xff]  ;;  %v471_v11 = vld [vmem:[%s2072_s26] sm:$0xff]  ;;  %vm1434_vm1 = vcmask 556032   ;;  %p1699_p13 = scmp.ne.s32.totalorder %s1833_s14, 1 }
  0x57   : > { %v600_v3 = vld [vmem:[%s2077_s29 + $0x8] sm:$0xff]  ;;  %v602_v4 = vld [vmem:[%s2077_s29 + $0x18] sm:$0xff]  ;;  %v473_v15 = vld [vmem:[%s2072_s26 + $0x10] sm:$0xff] }
  0x58   : > { %v728_v5 = vadd.f32 %v600_v3, %v472_v1  ;;  %v536_v6 = vld [vmem:[%s2072_s26 + $0x208] sm:$0xff]  ;;  %v538_v7 = vld [vmem:[%s2072_s26 + $0x218] sm:$0xff]  ;;  %v730_v8 = vadd.f32 %v602_v4, %v474_v2  ;;  %v599_v16 = vld [vmem:[%s2077_s29] sm:$0xff] }
  0x59   : > { %v664_v9 = vld [vmem:[%s2077_s29 + $0x208] sm:$0xff]  ;;  %v666_v10 = vld [vmem:[%s2077_s29 + $0x218] sm:$0xff]  ;;  %v601_v17 = vld [vmem:[%s2077_s29 + $0x10] sm:$0xff]  ;;  %v727_v19 = vadd.f32 %v599_v16, %v471_v11 }
  0x5a   : > { %v856_v12 = vmax.f32 %v728_v5, 0.0  ;;  %v792_v13 = vadd.f32 %v664_v9, %v536_v6  ;;  %v794_v14 = vadd.f32 %v666_v10, %v538_v7  ;;  %v858_v18 = vmax.f32 %v730_v8, 0.0  ;;  %v535_v21 = vld [vmem:[%s2072_s26 + $0x200] sm:$0xff]  ;;  %v537_v22 = vld [vmem:[%s2072_s26 + $0x210] sm:$0xff]  ;;  %v476_v28 = vld [vmem:[%s2072_s26 + $0x28] sm:$0xff] }
  0x5b   : > { %v729_v20 = vadd.f32 %v601_v17, %v473_v15  ;;  %v663_v23 = vld [vmem:[%s2077_s29 + $0x200] sm:$0xff]  ;;  %v665_v26 = vld [vmem:[%s2077_s29 + $0x210] sm:$0xff]  ;;  %v478_v29 = vld [vmem:[%s2072_s26 + $0x38] sm:$0xff]  ;;  %v855_v31 = vmax.f32 %v727_v19, 0.0 }
  0x5c   : > { %v920_v24 = vmax.f32 %v792_v13, 0.0  ;;  %v922_v25 = vmax.f32 %v794_v14, 0.0  ;;  %v791_v27 = vadd.f32 %v663_v23, %v535_v21  ;;  %v1112_v30 = vpack.c.bf16 %v858_v18, %v856_v12  ;;  %v604_v34 = vld [vmem:[%s2077_s29 + $0x28] sm:$0xff]  ;;  %v606_v35 = vld [vmem:[%s2077_s29 + $0x38] sm:$0xff]  ;;  %v475_v48 = vld [vmem:[%s2072_s26 + $0x20] sm:$0xff] }
  0x5d   : > { %v857_v32 = vmax.f32 %v729_v20, 0.0  ;;  %v793_v33 = vadd.f32 %v665_v26, %v537_v22  ;;  %v540_v36 = vld [vmem:[%s2072_s26 + $0x228] sm:$0xff]  ;;  %v732_v39 = vadd.f32 %v604_v34, %v476_v28  ;;  %v734_v40 = vadd.f32 %v606_v35, %v478_v29  ;;  %v542_v41 = vld [vmem:[%s2072_s26 + $0x238] sm:$0xff]  ;;  %v477_v49 = vld [vmem:[%s2072_s26 + $0x30] sm:$0xff] }
  0x5e   : > { %v1144_v37 = vpack.c.bf16 %v922_v25, %v920_v24  ;;  %v919_v38 = vmax.f32 %v791_v27, 0.0  ;;  %v668_v42 = vld [vmem:[%s2077_s29 + $0x228] sm:$0xff]  ;;  %v670_v43 = vld [vmem:[%s2077_s29 + $0x238] sm:$0xff]  ;;  %1175 = vmatprep.subr.bf16.mxu1 %v1112_v30  ;;  %v603_v50 = vld [vmem:[%s2077_s29 + $0x20] sm:$0xff] }
  0x5f   : > { %v1111_v44 = vpack.c.bf16 %v857_v32, %v855_v31  ;;  %v921_v45 = vmax.f32 %v793_v33, 0.0  ;;  %v796_v46 = vadd.f32 %v668_v42, %v540_v36  ;;  %v798_v47 = vadd.f32 %v670_v43, %v542_v41  ;;  %v605_v53 = vld [vmem:[%s2077_s29 + $0x30] sm:$0xff]  ;;  %v539_v55 = vld [vmem:[%s2072_s26 + $0x220] sm:$0xff]  ;;  %v480_v63 = vld [vmem:[%s2072_s26 + $0x48] sm:$0xff] }
  0x60   : > { %1288 = vmatprep.subr.bf16.mxu0 %v1144_v37  ;;  %v860_v51 = vmax.f32 %v732_v39, 0.0  ;;  %v862_v52 = vmax.f32 %v734_v40, 0.0  ;;  %v731_v54 = vadd.f32 %v603_v50, %v475_v48  ;;  %v541_v56 = vld [vmem:[%s2072_s26 + $0x230] sm:$0xff]  ;;  %v733_v60 = vadd.f32 %v605_v53, %v477_v49  ;;  %v667_v61 = vld [vmem:[%s2077_s29 + $0x220] sm:$0xff]  ;;  %v482_v4 = vld [vmem:[%s2072_s26 + $0x58] sm:$0xff] }
  0x61   : > { %1176 = vmatpush1.bf16.msra.mxu1 %v1111_v44  ;;  %v1143_v57 = vpack.c.bf16 %v921_v45, %v919_v38  ;;  %v924_v58 = vmax.f32 %v796_v46, 0.0  ;;  %v926_v59 = vmax.f32 %v798_v47, 0.0  ;;  %v669_v62 = vld [vmem:[%s2077_s29 + $0x230] sm:$0xff]  ;;  %v795_v2 = vadd.f32 %v667_v61, %v539_v55  ;;  %v608_v5 = vld [vmem:[%s2077_s29 + $0x48] sm:$0xff]  ;;  %v610_v6 = vld [vmem:[%s2077_s29 + $0x58] sm:$0xff] }
  0x62   : > { %v1114_v0 = vpack.c.bf16 %v862_v52, %v860_v51  ;;  %v859_v1 = vmax.f32 %v731_v54, 0.0  ;;  %v797_v3 = vadd.f32 %v669_v62, %v541_v56  ;;  %v861_v8 = vmax.f32 %v733_v60, 0.0  ;;  %v544_v11 = vld [vmem:[%s2072_s26 + $0x248] sm:$0xff]  ;;  %v546_v12 = vld [vmem:[%s2072_s26 + $0x258] sm:$0xff]  ;;  %v479_v18 = vld [vmem:[%s2072_s26 + $0x40] sm:$0xff] }
  0x63   : > { %1289 = vmatpush1.bf16.msra.mxu0 %v1143_v57  ;;  %v1146_v7 = vpack.c.bf16 %v926_v59, %v924_v58  ;;  %v736_v9 = vadd.f32 %v608_v5, %v480_v63  ;;  %v738_v10 = vadd.f32 %v610_v6, %v482_v4  ;;  %v672_v13 = vld [vmem:[%s2077_s29 + $0x248] sm:$0xff]  ;;  %v923_v14 = vmax.f32 %v795_v2, 0.0  ;;  %v674_v16 = vld [vmem:[%s2077_s29 + $0x258] sm:$0xff]  ;;  %v481_v19 = vld [vmem:[%s2072_s26 + $0x50] sm:$0xff] }
  0x64   : > { %1177 = vmatprep.subr.bf16.mxu1 %v1114_v0  ;;  %v925_v15 = vmax.f32 %v797_v3, 0.0  ;;  %v800_v17 = vadd.f32 %v672_v13, %v544_v11  ;;  %v1113_v20 = vpack.c.bf16 %v861_v8, %v859_v1  ;;  %v802_v23 = vadd.f32 %v674_v16, %v546_v12  ;;  %v607_v24 = vld [vmem:[%s2077_s29 + $0x40] sm:$0xff]  ;;  %v609_v25 = vld [vmem:[%s2077_s29 + $0x50] sm:$0xff]  ;;  %v484_v38 = vld [vmem:[%s2072_s26 + $0x68] sm:$0xff] }
  0x65   : > { %1290 = vmatprep.subr.bf16.mxu0 %v1146_v7  ;;  %v864_v21 = vmax.f32 %v736_v9, 0.0  ;;  %v866_v22 = vmax.f32 %v738_v10, 0.0  ;;  %v543_v26 = vld [vmem:[%s2072_s26 + $0x240] sm:$0xff]  ;;  %v735_v29 = vadd.f32 %v607_v24, %v479_v18  ;;  %v737_v30 = vadd.f32 %v609_v25, %v481_v19  ;;  %v545_v31 = vld [vmem:[%s2072_s26 + $0x250] sm:$0xff]  ;;  %v486_v39 = vld [vmem:[%s2072_s26 + $0x78] sm:$0xff] }
  0x66   : > { %v1145_v27 = vpack.c.bf16 %v925_v15, %v923_v14  ;;  %v928_v28 = vmax.f32 %v800_v17, 0.0  ;;  %v671_v32 = vld [vmem:[%s2077_s29 + $0x240] sm:$0xff]  ;;  %v673_v33 = vld [vmem:[%s2077_s29 + $0x250] sm:$0xff]  ;;  %1178 = vmatpush1.bf16.msra.mxu1 %v1113_v20  ;;  %v930_v35 = vmax.f32 %v802_v23, 0.0  ;;  %v612_v40 = vld [vmem:[%s2077_s29 + $0x68] sm:$0xff] }
  0x67   : > { %v1116_v34 = vpack.c.bf16 %v866_v22, %v864_v21  ;;  %v799_v36 = vadd.f32 %v671_v32, %v543_v26  ;;  %v801_v37 = vadd.f32 %v673_v33, %v545_v31  ;;  %v863_v41 = vmax.f32 %v735_v29, 0.0  ;;  %v614_v43 = vld [vmem:[%s2077_s29 + $0x78] sm:$0xff]  ;;  %v548_v45 = vld [vmem:[%s2072_s26 + $0x268] sm:$0xff]  ;;  %v483_v53 = vld [vmem:[%s2072_s26 + $0x60] sm:$0xff] }
  0x68   : > { %1291 = vmatpush1.bf16.msra.mxu0 %v1145_v27  ;;  %v865_v42 = vmax.f32 %v737_v30, 0.0  ;;  %v740_v44 = vadd.f32 %v612_v40, %v484_v38  ;;  %v550_v46 = vld [vmem:[%s2072_s26 + $0x278] sm:$0xff]  ;;  %v1148_v47 = vpack.c.bf16 %v930_v35, %v928_v28  ;;  %v742_v50 = vadd.f32 %v614_v43, %v486_v39  ;;  %v676_v51 = vld [vmem:[%s2077_s29 + $0x268] sm:$0xff]  ;;  %v485_v58 = vld [vmem:[%s2072_s26 + $0x70] sm:$0xff] }
  0x69   : > { %1179 = vmatprep.subr.bf16.mxu1 %v1116_v34  ;;  %v927_v48 = vmax.f32 %v799_v36, 0.0  ;;  %v929_v49 = vmax.f32 %v801_v37, 0.0  ;;  %v678_v52 = vld [vmem:[%s2077_s29 + $0x278] sm:$0xff]  ;;  %v804_v56 = vadd.f32 %v676_v51, %v548_v45  ;;  %v611_v59 = vld [vmem:[%s2077_s29 + $0x60] sm:$0xff]  ;;  %v613_v60 = vld [vmem:[%s2077_s29 + $0x70] sm:$0xff] }
  0x6a   : > { %v1115_v54 = vpack.c.bf16 %v865_v42, %v863_v41  ;;  %v868_v55 = vmax.f32 %v740_v44, 0.0  ;;  %v806_v57 = vadd.f32 %v678_v52, %v550_v46  ;;  %1292 = vmatprep.subr.bf16.mxu0 %v1148_v47  ;;  %v870_v62 = vmax.f32 %v742_v50, 0.0  ;;  %v547_v1 = vld [vmem:[%s2072_s26 + $0x260] sm:$0xff]  ;;  %v549_v2 = vld [vmem:[%s2072_s26 + $0x270] sm:$0xff]  ;;  %v488_v8 = vld [vmem:[%s2072_s26 + $0x88] sm:$0xff] }
  0x6b   : > { %v1147_v61 = vpack.c.bf16 %v929_v49, %v927_v48  ;;  %v739_v63 = vadd.f32 %v611_v59, %v483_v53  ;;  %v741_v0 = vadd.f32 %v613_v60, %v485_v58  ;;  %v675_v3 = vld [vmem:[%s2077_s29 + $0x260] sm:$0xff]  ;;  %v932_v4 = vmax.f32 %v804_v56, 0.0  ;;  %v677_v6 = vld [vmem:[%s2077_s29 + $0x270] sm:$0xff]  ;;  %v490_v9 = vld [vmem:[%s2072_s26 + $0x98] sm:$0xff] }
  0x6c   : > { %1180 = vmatpush1.bf16.msra.mxu1 %v1115_v54  ;;  %v934_v5 = vmax.f32 %v806_v57, 0.0  ;;  %v803_v7 = vadd.f32 %v675_v3, %v547_v1  ;;  %v1118_v10 = vpack.c.bf16 %v870_v62, %v868_v55  ;;  %v805_v13 = vadd.f32 %v677_v6, %v549_v2  ;;  %v616_v14 = vld [vmem:[%s2077_s29 + $0x88] sm:$0xff]  ;;  %v618_v15 = vld [vmem:[%s2077_s29 + $0x98] sm:$0xff]  ;;  %v487_v28 = vld [vmem:[%s2072_s26 + $0x80] sm:$0xff] }
  0x6d   : > { %1293 = vmatpush1.bf16.msra.mxu0 %v1147_v61  ;;  %v867_v11 = vmax.f32 %v739_v63, 0.0  ;;  %v869_v12 = vmax.f32 %v741_v0, 0.0  ;;  %v552_v16 = vld [vmem:[%s2072_s26 + $0x288] sm:$0xff]  ;;  %v744_v19 = vadd.f32 %v616_v14, %v488_v8  ;;  %v746_v20 = vadd.f32 %v618_v15, %v490_v9  ;;  %v554_v21 = vld [vmem:[%s2072_s26 + $0x298] sm:$0xff]  ;;  %v489_v29 = vld [vmem:[%s2072_s26 + $0x90] sm:$0xff] }
  0x6e   : > { %v1150_v17 = vpack.c.bf16 %v934_v5, %v932_v4  ;;  %v931_v18 = vmax.f32 %v803_v7, 0.0  ;;  %v680_v22 = vld [vmem:[%s2077_s29 + $0x288] sm:$0xff]  ;;  %v682_v23 = vld [vmem:[%s2077_s29 + $0x298] sm:$0xff]  ;;  %1181 = vmatprep.subr.bf16.mxu1 %v1118_v10  ;;  %v933_v25 = vmax.f32 %v805_v13, 0.0  ;;  %v615_v30 = vld [vmem:[%s2077_s29 + $0x80] sm:$0xff] }
  0x6f   : > { %v1117_v24 = vpack.c.bf16 %v869_v12, %v867_v11  ;;  %v808_v26 = vadd.f32 %v680_v22, %v552_v16  ;;  %v810_v27 = vadd.f32 %v682_v23, %v554_v21  ;;  %v872_v31 = vmax.f32 %v744_v19, 0.0  ;;  %v617_v33 = vld [vmem:[%s2077_s29 + $0x90] sm:$0xff]  ;;  %v551_v35 = vld [vmem:[%s2072_s26 + $0x280] sm:$0xff]  ;;  %v492_v43 = vld [vmem:[%s2072_s26 + $0xa8] sm:$0xff] }
  0x70   : > { %1294 = vmatprep.subr.bf16.mxu0 %v1150_v17  ;;  %v874_v32 = vmax.f32 %v746_v20, 0.0  ;;  %v743_v34 = vadd.f32 %v615_v30, %v487_v28  ;;  %v553_v36 = vld [vmem:[%s2072_s26 + $0x290] sm:$0xff]  ;;  %v1149_v37 = vpack.c.bf16 %v933_v25, %v931_v18  ;;  %v745_v40 = vadd.f32 %v617_v33, %v489_v29  ;;  %v679_v41 = vld [vmem:[%s2077_s29 + $0x280] sm:$0xff]  ;;  %v494_v48 = vld [vmem:[%s2072_s26 + $0xb8] sm:$0xff] }
  0x71   : > { %1182 = vmatpush1.bf16.msra.mxu1 %v1117_v24  ;;  %v936_v38 = vmax.f32 %v808_v26, 0.0  ;;  %v938_v39 = vmax.f32 %v810_v27, 0.0  ;;  %v681_v42 = vld [vmem:[%s2077_s29 + $0x290] sm:$0xff]  ;;  %v807_v46 = vadd.f32 %v679_v41, %v551_v35  ;;  %v620_v49 = vld [vmem:[%s2077_s29 + $0xa8] sm:$0xff]  ;;  %v622_v50 = vld [vmem:[%s2077_s29 + $0xb8] sm:$0xff] }
  0x72   : > { %v1120_v44 = vpack.c.bf16 %v874_v32, %v872_v31  ;;  %v871_v45 = vmax.f32 %v743_v34, 0.0  ;;  %v809_v47 = vadd.f32 %v681_v42, %v553_v36  ;;  %1295 = vmatpush1.bf16.msra.mxu0 %v1149_v37  ;;  %v873_v52 = vmax.f32 %v745_v40, 0.0  ;;  %v556_v55 = vld [vmem:[%s2072_s26 + $0x2a8] sm:$0xff]  ;;  %v558_v56 = vld [vmem:[%s2072_s26 + $0x2b8] sm:$0xff]  ;;  %v491_v62 = vld [vmem:[%s2072_s26 + $0xa0] sm:$0xff] }
  0x73   : > { %v1152_v51 = vpack.c.bf16 %v938_v39, %v936_v38  ;;  %v748_v53 = vadd.f32 %v620_v49, %v492_v43  ;;  %v750_v54 = vadd.f32 %v622_v50, %v494_v48  ;;  %v684_v57 = vld [vmem:[%s2077_s29 + $0x2a8] sm:$0xff]  ;;  %v935_v58 = vmax.f32 %v807_v46, 0.0  ;;  %v686_v60 = vld [vmem:[%s2077_s29 + $0x2b8] sm:$0xff]  ;;  %v493_v63 = vld [vmem:[%s2072_s26 + $0xb0] sm:$0xff] }
  0x74   : > { %1183 = vmatprep.subr.bf16.mxu1 %v1120_v44  ;;  %v937_v59 = vmax.f32 %v809_v47, 0.0  ;;  %v812_v61 = vadd.f32 %v684_v57, %v556_v55  ;;  %v1119_v0 = vpack.c.bf16 %v873_v52, %v871_v45  ;;  %v814_v3 = vadd.f32 %v686_v60, %v558_v56  ;;  %v619_v4 = vld [vmem:[%s2077_s29 + $0xa0] sm:$0xff]  ;;  %v621_v5 = vld [vmem:[%s2077_s29 + $0xb0] sm:$0xff]  ;;  %v496_v18 = vld [vmem:[%s2072_s26 + $0xc8] sm:$0xff] }
  0x75   : > { %1296 = vmatprep.subr.bf16.mxu0 %v1152_v51  ;;  %v876_v1 = vmax.f32 %v748_v53, 0.0  ;;  %v878_v2 = vmax.f32 %v750_v54, 0.0  ;;  %v555_v6 = vld [vmem:[%s2072_s26 + $0x2a0] sm:$0xff]  ;;  %v747_v9 = vadd.f32 %v619_v4, %v491_v62  ;;  %v749_v10 = vadd.f32 %v621_v5, %v493_v63  ;;  %v557_v11 = vld [vmem:[%s2072_s26 + $0x2b0] sm:$0xff]  ;;  %v498_v19 = vld [vmem:[%s2072_s26 + $0xd8] sm:$0xff] }
  0x76   : > { %v1151_v7 = vpack.c.bf16 %v937_v59, %v935_v58  ;;  %v940_v8 = vmax.f32 %v812_v61, 0.0  ;;  %v683_v12 = vld [vmem:[%s2077_s29 + $0x2a0] sm:$0xff]  ;;  %v685_v13 = vld [vmem:[%s2077_s29 + $0x2b0] sm:$0xff]  ;;  %1184 = vmatpush1.bf16.msra.mxu1 %v1119_v0  ;;  %v942_v15 = vmax.f32 %v814_v3, 0.0  ;;  %v624_v20 = vld [vmem:[%s2077_s29 + $0xc8] sm:$0xff] }
  0x77   : > { %v1122_v14 = vpack.c.bf16 %v878_v2, %v876_v1  ;;  %v811_v16 = vadd.f32 %v683_v12, %v555_v6  ;;  %v813_v17 = vadd.f32 %v685_v13, %v557_v11  ;;  %v875_v21 = vmax.f32 %v747_v9, 0.0  ;;  %v626_v23 = vld [vmem:[%s2077_s29 + $0xd8] sm:$0xff]  ;;  %v560_v25 = vld [vmem:[%s2072_s26 + $0x2c8] sm:$0xff]  ;;  %v495_v33 = vld [vmem:[%s2072_s26 + $0xc0] sm:$0xff] }
  0x78   : > { %1297 = vmatpush1.bf16.msra.mxu0 %v1151_v7  ;;  %v877_v22 = vmax.f32 %v749_v10, 0.0  ;;  %v752_v24 = vadd.f32 %v624_v20, %v496_v18  ;;  %v562_v26 = vld [vmem:[%s2072_s26 + $0x2d8] sm:$0xff]  ;;  %v1154_v27 = vpack.c.bf16 %v942_v15, %v940_v8  ;;  %v754_v30 = vadd.f32 %v626_v23, %v498_v19  ;;  %v688_v31 = vld [vmem:[%s2077_s29 + $0x2c8] sm:$0xff]  ;;  %v497_v38 = vld [vmem:[%s2072_s26 + $0xd0] sm:$0xff] }
  0x79   : > { %1185 = vmatprep.subr.bf16.mxu1 %v1122_v14  ;;  %v939_v28 = vmax.f32 %v811_v16, 0.0  ;;  %v941_v29 = vmax.f32 %v813_v17, 0.0  ;;  %v690_v32 = vld [vmem:[%s2077_s29 + $0x2d8] sm:$0xff]  ;;  %v816_v36 = vadd.f32 %v688_v31, %v560_v25  ;;  %v623_v39 = vld [vmem:[%s2077_s29 + $0xc0] sm:$0xff]  ;;  %v625_v40 = vld [vmem:[%s2077_s29 + $0xd0] sm:$0xff] }
  0x7a   : > { %v1121_v34 = vpack.c.bf16 %v877_v22, %v875_v21  ;;  %v880_v35 = vmax.f32 %v752_v24, 0.0  ;;  %v818_v37 = vadd.f32 %v690_v32, %v562_v26  ;;  %1298 = vmatprep.subr.bf16.mxu0 %v1154_v27  ;;  %v882_v42 = vmax.f32 %v754_v30, 0.0  ;;  %v559_v45 = vld [vmem:[%s2072_s26 + $0x2c0] sm:$0xff]  ;;  %v561_v46 = vld [vmem:[%s2072_s26 + $0x2d0] sm:$0xff]  ;;  %v500_v52 = vld [vmem:[%s2072_s26 + $0xe8] sm:$0xff] }
  0x7b   : > { %v1153_v41 = vpack.c.bf16 %v941_v29, %v939_v28  ;;  %v751_v43 = vadd.f32 %v623_v39, %v495_v33  ;;  %v753_v44 = vadd.f32 %v625_v40, %v497_v38  ;;  %v687_v47 = vld [vmem:[%s2077_s29 + $0x2c0] sm:$0xff]  ;;  %v944_v48 = vmax.f32 %v816_v36, 0.0  ;;  %v689_v50 = vld [vmem:[%s2077_s29 + $0x2d0] sm:$0xff]  ;;  %v502_v53 = vld [vmem:[%s2072_s26 + $0xf8] sm:$0xff] }
  0x7c   : > { %1186 = vmatpush1.bf16.msra.mxu1 %v1121_v34  ;;  %v946_v49 = vmax.f32 %v818_v37, 0.0  ;;  %v815_v51 = vadd.f32 %v687_v47, %v559_v45  ;;  %v1124_v54 = vpack.c.bf16 %v882_v42, %v880_v35  ;;  %v817_v57 = vadd.f32 %v689_v50, %v561_v46  ;;  %v628_v58 = vld [vmem:[%s2077_s29 + $0xe8] sm:$0xff]  ;;  %v630_v59 = vld [vmem:[%s2077_s29 + $0xf8] sm:$0xff]  ;;  %v499_v8 = vld [vmem:[%s2072_s26 + $0xe0] sm:$0xff] }
  0x7d   : > { %1299 = vmatpush1.bf16.msra.mxu0 %v1153_v41  ;;  %v879_v55 = vmax.f32 %v751_v43, 0.0  ;;  %v881_v56 = vmax.f32 %v753_v44, 0.0  ;;  %v564_v60 = vld [vmem:[%s2072_s26 + $0x2e8] sm:$0xff]  ;;  %v756_v63 = vadd.f32 %v628_v58, %v500_v52  ;;  %v758_v0 = vadd.f32 %v630_v59, %v502_v53  ;;  %v566_v1 = vld [vmem:[%s2072_s26 + $0x2f8] sm:$0xff]  ;;  %v501_v9 = vld [vmem:[%s2072_s26 + $0xf0] sm:$0xff] }
  0x7e   : > { %v1156_v61 = vpack.c.bf16 %v946_v49, %v944_v48  ;;  %v943_v62 = vmax.f32 %v815_v51, 0.0  ;;  %v692_v2 = vld [vmem:[%s2077_s29 + $0x2e8] sm:$0xff]  ;;  %v694_v3 = vld [vmem:[%s2077_s29 + $0x2f8] sm:$0xff]  ;;  %1187 = vmatprep.subr.bf16.mxu1 %v1124_v54  ;;  %v945_v5 = vmax.f32 %v817_v57, 0.0  ;;  %v627_v10 = vld [vmem:[%s2077_s29 + $0xe0] sm:$0xff] }
  0x7f   : > { %v1123_v4 = vpack.c.bf16 %v881_v56, %v879_v55  ;;  %v820_v6 = vadd.f32 %v692_v2, %v564_v60  ;;  %v822_v7 = vadd.f32 %v694_v3, %v566_v1  ;;  %v884_v11 = vmax.f32 %v756_v63, 0.0  ;;  %v629_v13 = vld [vmem:[%s2077_s29 + $0xf0] sm:$0xff]  ;;  %v563_v15 = vld [vmem:[%s2072_s26 + $0x2e0] sm:$0xff]  ;;  %v504_v23 = vld [vmem:[%s2072_s26 + $0x108] sm:$0xff] }
  0x80   : > { %1300 = vmatprep.subr.bf16.mxu0 %v1156_v61  ;;  %v886_v12 = vmax.f32 %v758_v0, 0.0  ;;  %v755_v14 = vadd.f32 %v627_v10, %v499_v8  ;;  %v565_v16 = vld [vmem:[%s2072_s26 + $0x2f0] sm:$0xff]  ;;  %v1155_v17 = vpack.c.bf16 %v945_v5, %v943_v62  ;;  %v757_v20 = vadd.f32 %v629_v13, %v501_v9  ;;  %v691_v21 = vld [vmem:[%s2077_s29 + $0x2e0] sm:$0xff]  ;;  %v506_v28 = vld [vmem:[%s2072_s26 + $0x118] sm:$0xff] }
  0x81   : > { %1188 = vmatpush1.bf16.msra.mxu1 %v1123_v4  ;;  %v948_v18 = vmax.f32 %v820_v6, 0.0  ;;  %v950_v19 = vmax.f32 %v822_v7, 0.0  ;;  %v693_v22 = vld [vmem:[%s2077_s29 + $0x2f0] sm:$0xff]  ;;  %v819_v26 = vadd.f32 %v691_v21, %v563_v15  ;;  %v632_v29 = vld [vmem:[%s2077_s29 + $0x108] sm:$0xff]  ;;  %v634_v30 = vld [vmem:[%s2077_s29 + $0x118] sm:$0xff] }
  0x82   : > { %v1126_v24 = vpack.c.bf16 %v886_v12, %v884_v11  ;;  %v883_v25 = vmax.f32 %v755_v14, 0.0  ;;  %v821_v27 = vadd.f32 %v693_v22, %v565_v16  ;;  %1301 = vmatpush1.bf16.msra.mxu0 %v1155_v17  ;;  %v885_v32 = vmax.f32 %v757_v20, 0.0  ;;  %v568_v35 = vld [vmem:[%s2072_s26 + $0x308] sm:$0xff]  ;;  %v570_v36 = vld [vmem:[%s2072_s26 + $0x318] sm:$0xff]  ;;  %v503_v42 = vld [vmem:[%s2072_s26 + $0x100] sm:$0xff] }
  0x83   : > { %v1158_v31 = vpack.c.bf16 %v950_v19, %v948_v18  ;;  %v760_v33 = vadd.f32 %v632_v29, %v504_v23  ;;  %v762_v34 = vadd.f32 %v634_v30, %v506_v28  ;;  %v696_v37 = vld [vmem:[%s2077_s29 + $0x308] sm:$0xff]  ;;  %v947_v38 = vmax.f32 %v819_v26, 0.0  ;;  %v698_v40 = vld [vmem:[%s2077_s29 + $0x318] sm:$0xff]  ;;  %v505_v43 = vld [vmem:[%s2072_s26 + $0x110] sm:$0xff] }
  0x84   : > { %1189 = vmatprep.subr.bf16.mxu1 %v1126_v24  ;;  %v949_v39 = vmax.f32 %v821_v27, 0.0  ;;  %v824_v41 = vadd.f32 %v696_v37, %v568_v35  ;;  %v1125_v44 = vpack.c.bf16 %v885_v32, %v883_v25  ;;  %v826_v47 = vadd.f32 %v698_v40, %v570_v36  ;;  %v631_v48 = vld [vmem:[%s2077_s29 + $0x100] sm:$0xff]  ;;  %v633_v49 = vld [vmem:[%s2077_s29 + $0x110] sm:$0xff]  ;;  %v508_v62 = vld [vmem:[%s2072_s26 + $0x128] sm:$0xff] }
  0x85   : > { %1302 = vmatprep.subr.bf16.mxu0 %v1158_v31  ;;  %v888_v45 = vmax.f32 %v760_v33, 0.0  ;;  %v890_v46 = vmax.f32 %v762_v34, 0.0  ;;  %v567_v50 = vld [vmem:[%s2072_s26 + $0x300] sm:$0xff]  ;;  %v759_v53 = vadd.f32 %v631_v48, %v503_v42  ;;  %v761_v54 = vadd.f32 %v633_v49, %v505_v43  ;;  %v569_v55 = vld [vmem:[%s2072_s26 + $0x310] sm:$0xff]  ;;  %v510_v63 = vld [vmem:[%s2072_s26 + $0x138] sm:$0xff] }
  0x86   : > { %v1157_v51 = vpack.c.bf16 %v949_v39, %v947_v38  ;;  %v952_v52 = vmax.f32 %v824_v41, 0.0  ;;  %v695_v56 = vld [vmem:[%s2077_s29 + $0x300] sm:$0xff]  ;;  %v697_v57 = vld [vmem:[%s2077_s29 + $0x310] sm:$0xff]  ;;  %1190 = vmatpush1.bf16.msra.mxu1 %v1125_v44  ;;  %v954_v59 = vmax.f32 %v826_v47, 0.0  ;;  %v636_v0 = vld [vmem:[%s2077_s29 + $0x128] sm:$0xff] }
  0x87   : > { %v1128_v58 = vpack.c.bf16 %v890_v46, %v888_v45  ;;  %v823_v60 = vadd.f32 %v695_v56, %v567_v50  ;;  %v825_v61 = vadd.f32 %v697_v57, %v569_v55  ;;  %v887_v1 = vmax.f32 %v759_v53, 0.0  ;;  %v638_v3 = vld [vmem:[%s2077_s29 + $0x138] sm:$0xff]  ;;  %v572_v5 = vld [vmem:[%s2072_s26 + $0x328] sm:$0xff]  ;;  %v507_v13 = vld [vmem:[%s2072_s26 + $0x120] sm:$0xff] }
  0x88   : > { %1303 = vmatpush1.bf16.msra.mxu0 %v1157_v51  ;;  %v889_v2 = vmax.f32 %v761_v54, 0.0  ;;  %v764_v4 = vadd.f32 %v636_v0, %v508_v62  ;;  %v574_v6 = vld [vmem:[%s2072_s26 + $0x338] sm:$0xff]  ;;  %v1160_v7 = vpack.c.bf16 %v954_v59, %v952_v52  ;;  %v766_v10 = vadd.f32 %v638_v3, %v510_v63  ;;  %v700_v11 = vld [vmem:[%s2077_s29 + $0x328] sm:$0xff]  ;;  %v509_v18 = vld [vmem:[%s2072_s26 + $0x130] sm:$0xff] }
  0x89   : > { %1191 = vmatprep.subr.bf16.mxu1 %v1128_v58  ;;  %v951_v8 = vmax.f32 %v823_v60, 0.0  ;;  %v953_v9 = vmax.f32 %v825_v61, 0.0  ;;  %v702_v12 = vld [vmem:[%s2077_s29 + $0x338] sm:$0xff]  ;;  %v828_v16 = vadd.f32 %v700_v11, %v572_v5  ;;  %v635_v19 = vld [vmem:[%s2077_s29 + $0x120] sm:$0xff]  ;;  %v637_v20 = vld [vmem:[%s2077_s29 + $0x130] sm:$0xff] }
  0x8a   : > { %v1127_v14 = vpack.c.bf16 %v889_v2, %v887_v1  ;;  %v892_v15 = vmax.f32 %v764_v4, 0.0  ;;  %v830_v17 = vadd.f32 %v702_v12, %v574_v6  ;;  %1304 = vmatprep.subr.bf16.mxu0 %v1160_v7  ;;  %v894_v22 = vmax.f32 %v766_v10, 0.0  ;;  %v571_v25 = vld [vmem:[%s2072_s26 + $0x320] sm:$0xff]  ;;  %v573_v26 = vld [vmem:[%s2072_s26 + $0x330] sm:$0xff]  ;;  %v512_v32 = vld [vmem:[%s2072_s26 + $0x148] sm:$0xff] }
  0x8b   : > { %v1159_v21 = vpack.c.bf16 %v953_v9, %v951_v8  ;;  %v763_v23 = vadd.f32 %v635_v19, %v507_v13  ;;  %v765_v24 = vadd.f32 %v637_v20, %v509_v18  ;;  %v699_v27 = vld [vmem:[%s2077_s29 + $0x320] sm:$0xff]  ;;  %v956_v28 = vmax.f32 %v828_v16, 0.0  ;;  %v701_v30 = vld [vmem:[%s2077_s29 + $0x330] sm:$0xff]  ;;  %v514_v33 = vld [vmem:[%s2072_s26 + $0x158] sm:$0xff] }
  0x8c   : > { %1192 = vmatpush1.bf16.msra.mxu1 %v1127_v14  ;;  %v958_v29 = vmax.f32 %v830_v17, 0.0  ;;  %v827_v31 = vadd.f32 %v699_v27, %v571_v25  ;;  %v1130_v34 = vpack.c.bf16 %v894_v22, %v892_v15  ;;  %v829_v37 = vadd.f32 %v701_v30, %v573_v26  ;;  %v640_v38 = vld [vmem:[%s2077_s29 + $0x148] sm:$0xff]  ;;  %v642_v39 = vld [vmem:[%s2077_s29 + $0x158] sm:$0xff]  ;;  %v511_v52 = vld [vmem:[%s2072_s26 + $0x140] sm:$0xff] }
  0x8d   : > { %1305 = vmatpush1.bf16.msra.mxu0 %v1159_v21  ;;  %v891_v35 = vmax.f32 %v763_v23, 0.0  ;;  %v893_v36 = vmax.f32 %v765_v24, 0.0  ;;  %v576_v40 = vld [vmem:[%s2072_s26 + $0x348] sm:$0xff]  ;;  %v768_v43 = vadd.f32 %v640_v38, %v512_v32  ;;  %v770_v44 = vadd.f32 %v642_v39, %v514_v33  ;;  %v578_v45 = vld [vmem:[%s2072_s26 + $0x358] sm:$0xff]  ;;  %v513_v53 = vld [vmem:[%s2072_s26 + $0x150] sm:$0xff] }
  0x8e   : > { %v1162_v41 = vpack.c.bf16 %v958_v29, %v956_v28  ;;  %v955_v42 = vmax.f32 %v827_v31, 0.0  ;;  %v704_v46 = vld [vmem:[%s2077_s29 + $0x348] sm:$0xff]  ;;  %v706_v47 = vld [vmem:[%s2077_s29 + $0x358] sm:$0xff]  ;;  %1193 = vmatprep.subr.bf16.mxu1 %v1130_v34  ;;  %v957_v49 = vmax.f32 %v829_v37, 0.0  ;;  %v639_v54 = vld [vmem:[%s2077_s29 + $0x140] sm:$0xff] }
  0x8f   : > { %v1129_v48 = vpack.c.bf16 %v893_v36, %v891_v35  ;;  %v832_v50 = vadd.f32 %v704_v46, %v576_v40  ;;  %v834_v51 = vadd.f32 %v706_v47, %v578_v45  ;;  %v896_v55 = vmax.f32 %v768_v43, 0.0  ;;  %v641_v57 = vld [vmem:[%s2077_s29 + $0x150] sm:$0xff]  ;;  %v575_v59 = vld [vmem:[%s2072_s26 + $0x340] sm:$0xff]  ;;  %v516_v3 = vld [vmem:[%s2072_s26 + $0x168] sm:$0xff] }
  0x90   : > { %1306 = vmatprep.subr.bf16.mxu0 %v1162_v41  ;;  %v898_v56 = vmax.f32 %v770_v44, 0.0  ;;  %v767_v58 = vadd.f32 %v639_v54, %v511_v52  ;;  %v577_v60 = vld [vmem:[%s2072_s26 + $0x350] sm:$0xff]  ;;  %v1161_v61 = vpack.c.bf16 %v957_v49, %v955_v42  ;;  %v769_v0 = vadd.f32 %v641_v57, %v513_v53  ;;  %v703_v1 = vld [vmem:[%s2077_s29 + $0x340] sm:$0xff]  ;;  %v518_v8 = vld [vmem:[%s2072_s26 + $0x178] sm:$0xff] }
  0x91   : > { %1194 = vmatpush1.bf16.msra.mxu1 %v1129_v48  ;;  %v960_v62 = vmax.f32 %v832_v50, 0.0  ;;  %v962_v63 = vmax.f32 %v834_v51, 0.0  ;;  %v705_v2 = vld [vmem:[%s2077_s29 + $0x350] sm:$0xff]  ;;  %v831_v6 = vadd.f32 %v703_v1, %v575_v59  ;;  %v644_v9 = vld [vmem:[%s2077_s29 + $0x168] sm:$0xff]  ;;  %v646_v10 = vld [vmem:[%s2077_s29 + $0x178] sm:$0xff] }
  0x92   : > { %v1132_v4 = vpack.c.bf16 %v898_v56, %v896_v55  ;;  %v895_v5 = vmax.f32 %v767_v58, 0.0  ;;  %v833_v7 = vadd.f32 %v705_v2, %v577_v60  ;;  %1307 = vmatpush1.bf16.msra.mxu0 %v1161_v61  ;;  %v897_v12 = vmax.f32 %v769_v0, 0.0  ;;  %v580_v15 = vld [vmem:[%s2072_s26 + $0x368] sm:$0xff]  ;;  %v582_v16 = vld [vmem:[%s2072_s26 + $0x378] sm:$0xff]  ;;  %v515_v22 = vld [vmem:[%s2072_s26 + $0x160] sm:$0xff] }
  0x93   : > { %v1164_v11 = vpack.c.bf16 %v962_v63, %v960_v62  ;;  %v772_v13 = vadd.f32 %v644_v9, %v516_v3  ;;  %v774_v14 = vadd.f32 %v646_v10, %v518_v8  ;;  %v708_v17 = vld [vmem:[%s2077_s29 + $0x368] sm:$0xff]  ;;  %v959_v18 = vmax.f32 %v831_v6, 0.0  ;;  %v710_v20 = vld [vmem:[%s2077_s29 + $0x378] sm:$0xff]  ;;  %v517_v23 = vld [vmem:[%s2072_s26 + $0x170] sm:$0xff] }
  0x94   : > { %1195 = vmatprep.subr.bf16.mxu1 %v1132_v4  ;;  %v961_v19 = vmax.f32 %v833_v7, 0.0  ;;  %v836_v21 = vadd.f32 %v708_v17, %v580_v15  ;;  %v1131_v24 = vpack.c.bf16 %v897_v12, %v895_v5  ;;  %v838_v27 = vadd.f32 %v710_v20, %v582_v16  ;;  %v643_v28 = vld [vmem:[%s2077_s29 + $0x160] sm:$0xff]  ;;  %v645_v29 = vld [vmem:[%s2077_s29 + $0x170] sm:$0xff]  ;;  %v520_v42 = vld [vmem:[%s2072_s26 + $0x188] sm:$0xff] }
  0x95   : > { %1308 = vmatprep.subr.bf16.mxu0 %v1164_v11  ;;  %v900_v25 = vmax.f32 %v772_v13, 0.0  ;;  %v902_v26 = vmax.f32 %v774_v14, 0.0  ;;  %v579_v30 = vld [vmem:[%s2072_s26 + $0x360] sm:$0xff]  ;;  %v771_v33 = vadd.f32 %v643_v28, %v515_v22  ;;  %v773_v34 = vadd.f32 %v645_v29, %v517_v23  ;;  %v581_v35 = vld [vmem:[%s2072_s26 + $0x370] sm:$0xff]  ;;  %v522_v43 = vld [vmem:[%s2072_s26 + $0x198] sm:$0xff] }
  0x96   : > { %v1163_v31 = vpack.c.bf16 %v961_v19, %v959_v18  ;;  %v964_v32 = vmax.f32 %v836_v21, 0.0  ;;  %v707_v36 = vld [vmem:[%s2077_s29 + $0x360] sm:$0xff]  ;;  %v709_v37 = vld [vmem:[%s2077_s29 + $0x370] sm:$0xff]  ;;  %1196 = vmatpush1.bf16.msra.mxu1 %v1131_v24  ;;  %v966_v39 = vmax.f32 %v838_v27, 0.0  ;;  %v648_v44 = vld [vmem:[%s2077_s29 + $0x188] sm:$0xff] }
  0x97   : > { %v1134_v38 = vpack.c.bf16 %v902_v26, %v900_v25  ;;  %v835_v40 = vadd.f32 %v707_v36, %v579_v30  ;;  %v837_v41 = vadd.f32 %v709_v37, %v581_v35  ;;  %v899_v45 = vmax.f32 %v771_v33, 0.0  ;;  %v650_v47 = vld [vmem:[%s2077_s29 + $0x198] sm:$0xff]  ;;  %v584_v49 = vld [vmem:[%s2072_s26 + $0x388] sm:$0xff]  ;;  %v519_v57 = vld [vmem:[%s2072_s26 + $0x180] sm:$0xff] }
  0x98   : > { %1309 = vmatpush1.bf16.msra.mxu0 %v1163_v31  ;;  %v901_v46 = vmax.f32 %v773_v34, 0.0  ;;  %v776_v48 = vadd.f32 %v648_v44, %v520_v42  ;;  %v586_v50 = vld [vmem:[%s2072_s26 + $0x398] sm:$0xff]  ;;  %v1166_v51 = vpack.c.bf16 %v966_v39, %v964_v32  ;;  %v778_v54 = vadd.f32 %v650_v47, %v522_v43  ;;  %v712_v55 = vld [vmem:[%s2077_s29 + $0x388] sm:$0xff]  ;;  %v521_v62 = vld [vmem:[%s2072_s26 + $0x190] sm:$0xff] }
  0x99   : > { %1197 = vmatprep.subr.bf16.mxu1 %v1134_v38  ;;  %v963_v52 = vmax.f32 %v835_v40, 0.0  ;;  %v965_v53 = vmax.f32 %v837_v41, 0.0  ;;  %v714_v56 = vld [vmem:[%s2077_s29 + $0x398] sm:$0xff]  ;;  %v840_v60 = vadd.f32 %v712_v55, %v584_v49  ;;  %v647_v63 = vld [vmem:[%s2077_s29 + $0x180] sm:$0xff]  ;;  %v649_v0 = vld [vmem:[%s2077_s29 + $0x190] sm:$0xff] }
  0x9a   : > { %v1133_v58 = vpack.c.bf16 %v901_v46, %v899_v45  ;;  %v904_v59 = vmax.f32 %v776_v48, 0.0  ;;  %v842_v61 = vadd.f32 %v714_v56, %v586_v50  ;;  %1310 = vmatprep.subr.bf16.mxu0 %v1166_v51  ;;  %v906_v2 = vmax.f32 %v778_v54, 0.0  ;;  %v583_v5 = vld [vmem:[%s2072_s26 + $0x380] sm:$0xff]  ;;  %v585_v6 = vld [vmem:[%s2072_s26 + $0x390] sm:$0xff]  ;;  %v524_v12 = vld [vmem:[%s2072_s26 + $0x1a8] sm:$0xff] }
  0x9b   : > { %v1165_v1 = vpack.c.bf16 %v965_v53, %v963_v52  ;;  %v775_v3 = vadd.f32 %v647_v63, %v519_v57  ;;  %v777_v4 = vadd.f32 %v649_v0, %v521_v62  ;;  %v711_v7 = vld [vmem:[%s2077_s29 + $0x380] sm:$0xff]  ;;  %v968_v8 = vmax.f32 %v840_v60, 0.0  ;;  %v713_v10 = vld [vmem:[%s2077_s29 + $0x390] sm:$0xff]  ;;  %v526_v13 = vld [vmem:[%s2072_s26 + $0x1b8] sm:$0xff] }
  0x9c   : > { %1198 = vmatpush1.bf16.msra.mxu1 %v1133_v58  ;;  %v970_v9 = vmax.f32 %v842_v61, 0.0  ;;  %v839_v11 = vadd.f32 %v711_v7, %v583_v5  ;;  %v1136_v14 = vpack.c.bf16 %v906_v2, %v904_v59  ;;  %v841_v17 = vadd.f32 %v713_v10, %v585_v6  ;;  %v652_v18 = vld [vmem:[%s2077_s29 + $0x1a8] sm:$0xff]  ;;  %v654_v19 = vld [vmem:[%s2077_s29 + $0x1b8] sm:$0xff]  ;;  %v523_v32 = vld [vmem:[%s2072_s26 + $0x1a0] sm:$0xff] }
  0x9d   : > { %1311 = vmatpush1.bf16.msra.mxu0 %v1165_v1  ;;  %v903_v15 = vmax.f32 %v775_v3, 0.0  ;;  %v905_v16 = vmax.f32 %v777_v4, 0.0  ;;  %v588_v20 = vld [vmem:[%s2072_s26 + $0x3a8] sm:$0xff]  ;;  %v780_v23 = vadd.f32 %v652_v18, %v524_v12  ;;  %v782_v24 = vadd.f32 %v654_v19, %v526_v13  ;;  %v590_v25 = vld [vmem:[%s2072_s26 + $0x3b8] sm:$0xff]  ;;  %v525_v33 = vld [vmem:[%s2072_s26 + $0x1b0] sm:$0xff] }
  0x9e   : > { %v1168_v21 = vpack.c.bf16 %v970_v9, %v968_v8  ;;  %v967_v22 = vmax.f32 %v839_v11, 0.0  ;;  %v716_v26 = vld [vmem:[%s2077_s29 + $0x3a8] sm:$0xff]  ;;  %v718_v27 = vld [vmem:[%s2077_s29 + $0x3b8] sm:$0xff]  ;;  %1199 = vmatprep.subr.bf16.mxu1 %v1136_v14  ;;  %v969_v29 = vmax.f32 %v841_v17, 0.0  ;;  %v651_v34 = vld [vmem:[%s2077_s29 + $0x1a0] sm:$0xff] }
  0x9f   : > { %v1135_v28 = vpack.c.bf16 %v905_v16, %v903_v15  ;;  %v844_v30 = vadd.f32 %v716_v26, %v588_v20  ;;  %v846_v31 = vadd.f32 %v718_v27, %v590_v25  ;;  %v908_v35 = vmax.f32 %v780_v23, 0.0  ;;  %v653_v37 = vld [vmem:[%s2077_s29 + $0x1b0] sm:$0xff]  ;;  %v587_v39 = vld [vmem:[%s2072_s26 + $0x3a0] sm:$0xff]  ;;  %v528_v47 = vld [vmem:[%s2072_s26 + $0x1c8] sm:$0xff] }
  0xa0   : > { %1312 = vmatprep.subr.bf16.mxu0 %v1168_v21  ;;  %v910_v36 = vmax.f32 %v782_v24, 0.0  ;;  %v779_v38 = vadd.f32 %v651_v34, %v523_v32  ;;  %v589_v40 = vld [vmem:[%s2072_s26 + $0x3b0] sm:$0xff]  ;;  %v1167_v41 = vpack.c.bf16 %v969_v29, %v967_v22  ;;  %v781_v44 = vadd.f32 %v653_v37, %v525_v33  ;;  %v715_v45 = vld [vmem:[%s2077_s29 + $0x3a0] sm:$0xff]  ;;  %v530_v52 = vld [vmem:[%s2072_s26 + $0x1d8] sm:$0xff] }
  0xa1   : > { %1200 = vmatpush1.bf16.msra.mxu1 %v1135_v28  ;;  %v972_v42 = vmax.f32 %v844_v30, 0.0  ;;  %v974_v43 = vmax.f32 %v846_v31, 0.0  ;;  %v717_v46 = vld [vmem:[%s2077_s29 + $0x3b0] sm:$0xff]  ;;  %v843_v50 = vadd.f32 %v715_v45, %v587_v39  ;;  %v656_v53 = vld [vmem:[%s2077_s29 + $0x1c8] sm:$0xff]  ;;  %v658_v54 = vld [vmem:[%s2077_s29 + $0x1d8] sm:$0xff] }
  0xa2   : > { %v1138_v48 = vpack.c.bf16 %v910_v36, %v908_v35  ;;  %v907_v49 = vmax.f32 %v779_v38, 0.0  ;;  %v845_v51 = vadd.f32 %v717_v46, %v589_v40  ;;  %1313 = vmatpush1.bf16.msra.mxu0 %v1167_v41  ;;  %v909_v56 = vmax.f32 %v781_v44, 0.0  ;;  %v592_v59 = vld [vmem:[%s2072_s26 + $0x3c8] sm:$0xff]  ;;  %v594_v60 = vld [vmem:[%s2072_s26 + $0x3d8] sm:$0xff]  ;;  %v527_v2 = vld [vmem:[%s2072_s26 + $0x1c0] sm:$0xff] }
  0xa3   : > { %v1170_v55 = vpack.c.bf16 %v974_v43, %v972_v42  ;;  %v784_v57 = vadd.f32 %v656_v53, %v528_v47  ;;  %v786_v58 = vadd.f32 %v658_v54, %v530_v52  ;;  %v720_v61 = vld [vmem:[%s2077_s29 + $0x3c8] sm:$0xff]  ;;  %v971_v62 = vmax.f32 %v843_v50, 0.0  ;;  %v722_v0 = vld [vmem:[%s2077_s29 + $0x3d8] sm:$0xff]  ;;  %v529_v3 = vld [vmem:[%s2072_s26 + $0x1d0] sm:$0xff] }
  0xa4   : > { %1201 = vmatprep.subr.bf16.mxu1 %v1138_v48  ;;  %v973_v63 = vmax.f32 %v845_v51, 0.0  ;;  %v848_v1 = vadd.f32 %v720_v61, %v592_v59  ;;  %v1137_v4 = vpack.c.bf16 %v909_v56, %v907_v49  ;;  %v850_v7 = vadd.f32 %v722_v0, %v594_v60  ;;  %v655_v8 = vld [vmem:[%s2077_s29 + $0x1c0] sm:$0xff]  ;;  %v657_v9 = vld [vmem:[%s2077_s29 + $0x1d0] sm:$0xff]  ;;  %v532_v22 = vld [vmem:[%s2072_s26 + $0x1e8] sm:$0xff] }
  0xa5   : > { %1314 = vmatprep.subr.bf16.mxu0 %v1170_v55  ;;  %v912_v5 = vmax.f32 %v784_v57, 0.0  ;;  %v914_v6 = vmax.f32 %v786_v58, 0.0  ;;  %v591_v10 = vld [vmem:[%s2072_s26 + $0x3c0] sm:$0xff]  ;;  %v783_v13 = vadd.f32 %v655_v8, %v527_v2  ;;  %v785_v14 = vadd.f32 %v657_v9, %v529_v3  ;;  %v593_v15 = vld [vmem:[%s2072_s26 + $0x3d0] sm:$0xff]  ;;  %v534_v23 = vld [vmem:[%s2072_s26 + $0x1f8] sm:$0xff] }
  0xa6   : > { %v1169_v11 = vpack.c.bf16 %v973_v63, %v971_v62  ;;  %v976_v12 = vmax.f32 %v848_v1, 0.0  ;;  %v719_v16 = vld [vmem:[%s2077_s29 + $0x3c0] sm:$0xff]  ;;  %v721_v17 = vld [vmem:[%s2077_s29 + $0x3d0] sm:$0xff]  ;;  %1202 = vmatpush1.bf16.msra.mxu1 %v1137_v4  ;;  %v978_v19 = vmax.f32 %v850_v7, 0.0  ;;  %v660_v24 = vld [vmem:[%s2077_s29 + $0x1e8] sm:$0xff] }
  0xa7   : > { %v1140_v18 = vpack.c.bf16 %v914_v6, %v912_v5  ;;  %v847_v20 = vadd.f32 %v719_v16, %v591_v10  ;;  %v849_v21 = vadd.f32 %v721_v17, %v593_v15  ;;  %v911_v25 = vmax.f32 %v783_v13, 0.0  ;;  %v662_v27 = vld [vmem:[%s2077_s29 + $0x1f8] sm:$0xff]  ;;  %v596_v29 = vld [vmem:[%s2072_s26 + $0x3e8] sm:$0xff]  ;;  %v531_v37 = vld [vmem:[%s2072_s26 + $0x1e0] sm:$0xff] }
  0xa8   : > { %1315 = vmatpush1.bf16.msra.mxu0 %v1169_v11  ;;  %v913_v26 = vmax.f32 %v785_v14, 0.0  ;;  %v788_v28 = vadd.f32 %v660_v24, %v532_v22  ;;  %v598_v30 = vld [vmem:[%s2072_s26 + $0x3f8] sm:$0xff]  ;;  %v1172_v31 = vpack.c.bf16 %v978_v19, %v976_v12  ;;  %v790_v34 = vadd.f32 %v662_v27, %v534_v23  ;;  %v724_v35 = vld [vmem:[%s2077_s29 + $0x3e8] sm:$0xff]  ;;  %v533_v42 = vld [vmem:[%s2072_s26 + $0x1f0] sm:$0xff] }
  0xa9   : > { %1203 = vmatprep.subr.bf16.mxu1 %v1140_v18  ;;  %v975_v32 = vmax.f32 %v847_v20, 0.0  ;;  %v977_v33 = vmax.f32 %v849_v21, 0.0  ;;  %v726_v36 = vld [vmem:[%s2077_s29 + $0x3f8] sm:$0xff]  ;;  %v852_v40 = vadd.f32 %v724_v35, %v596_v29  ;;  %v659_v43 = vld [vmem:[%s2077_s29 + $0x1e0] sm:$0xff]  ;;  %v661_v44 = vld [vmem:[%s2077_s29 + $0x1f0] sm:$0xff] }
  0xaa   : > { %v1139_v38 = vpack.c.bf16 %v913_v26, %v911_v25  ;;  %v916_v39 = vmax.f32 %v788_v28, 0.0  ;;  %v854_v41 = vadd.f32 %v726_v36, %v598_v30  ;;  %1316 = vmatprep.subr.bf16.mxu0 %v1172_v31  ;;  %v918_v46 = vmax.f32 %v790_v34, 0.0  ;;  %v595_v49 = vld [vmem:[%s2072_s26 + $0x3e0] sm:$0xff]  ;;  %v597_v50 = vld [vmem:[%s2072_s26 + $0x3f0] sm:$0xff]  ;;  %v1016_v56 = vld [vmem:[%s2084_s15 + $0x8] sm:$0xff] }
  0xab   : > { %v1171_v45 = vpack.c.bf16 %v977_v33, %v975_v32  ;;  %v787_v47 = vadd.f32 %v659_v43, %v531_v37  ;;  %v789_v48 = vadd.f32 %v661_v44, %v533_v42  ;;  %v723_v51 = vld [vmem:[%s2077_s29 + $0x3e0] sm:$0xff]  ;;  %v980_v52 = vmax.f32 %v852_v40, 0.0  ;;  %v725_v54 = vld [vmem:[%s2077_s29 + $0x3f0] sm:$0xff]  ;;  %v1020_v57 = vld [vmem:[%s2084_s15 + $0x28] sm:$0xff] }
  0xac   : > { %1204 = vmatpush1.bf16.msra.mxu1 %v1139_v38  ;;  %v982_v53 = vmax.f32 %v854_v41, 0.0  ;;  %v851_v55 = vadd.f32 %v723_v51, %v595_v49  ;;  %v1142_v58 = vpack.c.bf16 %v918_v46, %v916_v39  ;;  %v853_v61 = vadd.f32 %v725_v54, %v597_v50  ;;  %v1018_v62 = vld [vmem:[%s2084_s15 + $0x18] sm:$0xff]  ;;  %v1015_v0 = vld [vmem:[%s2084_s15] sm:$0xff]  ;;  %v1017_v6 = vld [vmem:[%s2084_s15 + $0x10] sm:$0xff] }
  0xad   : > { %1317 = vmatpush1.bf16.msra.mxu0 %v1171_v45  ;;  %v915_v59 = vmax.f32 %v787_v47, 0.0  ;;  %v917_v60 = vmax.f32 %v789_v48, 0.0  ;;  %v1022_v63 = vld [vmem:[%s2084_s15 + $0x38] sm:$0xff]  ;;  %v1080_v3 = vpack.c.bf16 %v1020_v57, %v1016_v56  ;;  %v1019_v5 = vld [vmem:[%s2084_s15 + $0x20] sm:$0xff]  ;;  %v1021_v9 = vld [vmem:[%s2084_s15 + $0x30] sm:$0xff] }
  0xae   : > { %v1174_v1 = vpack.c.bf16 %v982_v53, %v980_v52  ;;  %v979_v2 = vmax.f32 %v851_v55, 0.0  ;;  %v1082_v4 = vpack.c.bf16 %v1022_v63, %v1018_v62  ;;  %1205 = vmatprep.subr.bf16.mxu1 %v1142_v58  ;;  %v981_v8 = vmax.f32 %v853_v61, 0.0  ;;  %v1024_v10 = vld [vmem:[%s2084_s15 + $0x48] sm:$0xff]  ;;  %v1026_v13 = vld [vmem:[%s2084_s15 + $0x58] sm:$0xff]  ;;  %v1023_v19 = vld [vmem:[%s2084_s15 + $0x40] sm:$0xff] }
  0xaf   : > { %v1141_v7 = vpack.c.bf16 %v917_v60, %v915_v59  ;;  %v1028_v11 = vld [vmem:[%s2084_s15 + $0x68] sm:$0xff]  ;;  %1207 = vmatprep.mubr.bf16.mxu1 %v1080_v3  ;;  %v1079_v12 = vpack.c.bf16 %v1019_v5, %v1015_v0  ;;  %v1030_v14 = vld [vmem:[%s2084_s15 + $0x78] sm:$0xff]  ;;  %v1081_v17 = vpack.c.bf16 %v1021_v9, %v1017_v6  ;;  %v1027_v20 = vld [vmem:[%s2084_s15 + $0x60] sm:$0xff] }
  0xb0   : > { %1318 = vmatprep.subr.bf16.mxu0 %v1174_v1  ;;  %v1173_v15 = vpack.c.bf16 %v981_v8, %v979_v2  ;;  %1320 = vmatprep.mubr.bf16.mxu0 %v1082_v4  ;;  %v1084_v16 = vpack.c.bf16 %v1028_v11, %v1024_v10  ;;  %v1086_v18 = vpack.c.bf16 %v1030_v14, %v1026_v13  ;;  %v1032_v21 = vld [vmem:[%s2084_s15 + $0x88] sm:$0xff]  ;;  %v1025_v23 = vld [vmem:[%s2084_s15 + $0x50] sm:$0xff]  ;;  %v1034_v26 = vld [vmem:[%s2084_s15 + $0x98] sm:$0xff] }
  0xb1   : > { %1206 = vmatpush1.bf16.msra.mxu1 %v1141_v7  ;;  %v1036_v22 = vld [vmem:[%s2084_s15 + $0xa8] sm:$0xff]  ;;  %v1029_v24 = vld [vmem:[%s2084_s15 + $0x70] sm:$0xff]  ;;  %v1083_v25 = vpack.c.bf16 %v1027_v20, %v1023_v19  ;;  %v1038_v27 = vld [vmem:[%s2084_s15 + $0xb8] sm:$0xff] }
  0xb2   : > { %1319 = vmatpush1.bf16.msra.mxu0 %v1173_v15  ;;  %v1088_v28 = vpack.c.bf16 %v1036_v22, %v1032_v21  ;;  %v1085_v29 = vpack.c.bf16 %v1029_v24, %v1025_v23  ;;  %v1090_v30 = vpack.c.bf16 %v1038_v27, %v1034_v26  ;;  %v1031_v31 = vld [vmem:[%s2084_s15 + $0x80] sm:$0xff]  ;;  %v1040_v33 = vld [vmem:[%s2084_s15 + $0xc8] sm:$0xff]  ;;  %v1033_v35 = vld [vmem:[%s2084_s15 + $0x90] sm:$0xff] }
  0xb3   : > { %v1035_v32 = vld [vmem:[%s2084_s15 + $0xa0] sm:$0xff]  ;;  %v1044_v34 = vld [vmem:[%s2084_s15 + $0xe8] sm:$0xff]  ;;  %v1037_v36 = vld [vmem:[%s2084_s15 + $0xb0] sm:$0xff] }
  0xb4   : > { %1208 = vmatmul.mubr.bf16.vlgmr.msra.gmra.mrb[0].mxu1 %v1079_v12  ;;  %v1087_v37 = vpack.c.bf16 %v1035_v32, %v1031_v31  ;;  %v1042_v38 = vld [vmem:[%s2084_s15 + $0xd8] sm:$0xff]  ;;  %v1092_v40 = vpack.c.bf16 %v1044_v34, %v1040_v33  ;;  %v1089_v41 = vpack.c.bf16 %v1037_v36, %v1033_v35  ;;  %v1039_v43 = vld [vmem:[%s2084_s15 + $0xc0] sm:$0xff]  ;;  %v1048_v45 = vld [vmem:[%s2084_s15 + $0x108] sm:$0xff] }
  0xb5   : > { %1217 = vmatprep.mubr.bf16.mxu1 %v1084_v16  ;;  %1321 = vmatmul.mubr.bf16.vlgmr.msra.gmra.mrb[0].mxu0 %v1081_v17  ;;  %v1046_v39 = vld [vmem:[%s2084_s15 + $0xf8] sm:$0xff]  ;;  %v1043_v44 = vld [vmem:[%s2084_s15 + $0xe0] sm:$0xff]  ;;  %v1052_v46 = vld [vmem:[%s2084_s15 + $0x128] sm:$0xff] }
  0xb6   : > { %1330 = vmatprep.mubr.bf16.mxu0 %v1086_v18  ;;  %v1094_v42 = vpack.c.bf16 %v1046_v39, %v1042_v38  ;;  %v1041_v47 = vld [vmem:[%s2084_s15 + $0xd0] sm:$0xff]  ;;  %v1091_v49 = vpack.c.bf16 %v1043_v44, %v1039_v43  ;;  %v1050_v50 = vld [vmem:[%s2084_s15 + $0x118] sm:$0xff]  ;;  %v1096_v52 = vpack.c.bf16 %v1052_v46, %v1048_v45  ;;  %v1047_v55 = vld [vmem:[%s2084_s15 + $0x100] sm:$0xff] }
  0xb7   : > { %v1045_v48 = vld [vmem:[%s2084_s15 + $0xf0] sm:$0xff]  ;;  %v1054_v51 = vld [vmem:[%s2084_s15 + $0x138] sm:$0xff]  ;;  %v1051_v56 = vld [vmem:[%s2084_s15 + $0x120] sm:$0xff] }
  0xb8   : > { %v1093_v53 = vpack.c.bf16 %v1045_v48, %v1041_v47  ;;  %v1098_v54 = vpack.c.bf16 %v1054_v51, %v1050_v50  ;;  %v1056_v57 = vld [vmem:[%s2084_s15 + $0x148] sm:$0xff]  ;;  %v1049_v59 = vld [vmem:[%s2084_s15 + $0x110] sm:$0xff]  ;;  %v1095_v61 = vpack.c.bf16 %v1051_v56, %v1047_v55  ;;  %v1058_v62 = vld [vmem:[%s2084_s15 + $0x158] sm:$0xff] }
  0xb9   : > { %v1060_v58 = vld [vmem:[%s2084_s15 + $0x168] sm:$0xff]  ;;  %v1053_v60 = vld [vmem:[%s2084_s15 + $0x130] sm:$0xff]  ;;  %v1062_v63 = vld [vmem:[%s2084_s15 + $0x178] sm:$0xff] }
  0xba   : > { %v1100_v0 = vpack.c.bf16 %v1060_v58, %v1056_v57  ;;  %v1097_v1 = vpack.c.bf16 %v1053_v60, %v1049_v59  ;;  %v1102_v2 = vpack.c.bf16 %v1062_v63, %v1058_v62  ;;  %v1055_v3 = vld [vmem:[%s2084_s15 + $0x140] sm:$0xff]  ;;  %v1064_v5 = vld [vmem:[%s2084_s15 + $0x188] sm:$0xff]  ;;  %v1057_v7 = vld [vmem:[%s2084_s15 + $0x150] sm:$0xff] }
  0xbb   : > { %v1059_v4 = vld [vmem:[%s2084_s15 + $0x160] sm:$0xff]  ;;  %v1068_v6 = vld [vmem:[%s2084_s15 + $0x1a8] sm:$0xff]  ;;  %v1061_v8 = vld [vmem:[%s2084_s15 + $0x170] sm:$0xff] }
  0xbc   : > { %1218 = vmatmul.mubr.bf16.gmra.mrb[4].mxu1 %v1083_v25  ;;  %v1099_v9 = vpack.c.bf16 %v1059_v4, %v1055_v3  ;;  %v1066_v10 = vld [vmem:[%s2084_s15 + $0x198] sm:$0xff]  ;;  %v1104_v12 = vpack.c.bf16 %v1068_v6, %v1064_v5  ;;  %v1101_v13 = vpack.c.bf16 %v1061_v8, %v1057_v7  ;;  %v1063_v15 = vld [vmem:[%s2084_s15 + $0x180] sm:$0xff]  ;;  %v1072_v17 = vld [vmem:[%s2084_s15 + $0x1c8] sm:$0xff] }
  0xbd   : > { %1227 = vmatprep.mubr.bf16.mxu1 %v1088_v28  ;;  %1331 = vmatmul.mubr.bf16.gmra.mrb[4].mxu0 %v1085_v29  ;;  %v1070_v11 = vld [vmem:[%s2084_s15 + $0x1b8] sm:$0xff]  ;;  %v1067_v16 = vld [vmem:[%s2084_s15 + $0x1a0] sm:$0xff]  ;;  %v1076_v18 = vld [vmem:[%s2084_s15 + $0x1e8] sm:$0xff] }
  0xbe   : > { %1340 = vmatprep.mubr.bf16.mxu0 %v1090_v30  ;;  %v1106_v14 = vpack.c.bf16 %v1070_v11, %v1066_v10  ;;  %v1065_v19 = vld [vmem:[%s2084_s15 + $0x190] sm:$0xff]  ;;  %v1103_v21 = vpack.c.bf16 %v1067_v16, %v1063_v15  ;;  %v1074_v22 = vld [vmem:[%s2084_s15 + $0x1d8] sm:$0xff]  ;;  %v1108_v24 = vpack.c.bf16 %v1076_v18, %v1072_v17  ;;  %v1071_v27 = vld [vmem:[%s2084_s15 + $0x1c0] sm:$0xff] }
  0xbf   : > { %v1069_v20 = vld [vmem:[%s2084_s15 + $0x1b0] sm:$0xff]  ;;  %v1078_v23 = vld [vmem:[%s2084_s15 + $0x1f8] sm:$0xff]  ;;  %v1075_v28 = vld [vmem:[%s2084_s15 + $0x1e0] sm:$0xff] }
  0xc0   : > { %v1105_v25 = vpack.c.bf16 %v1069_v20, %v1065_v19  ;;  %v1110_v26 = vpack.c.bf16 %v1078_v23, %v1074_v22  ;;  %v1073_v29 = vld [vmem:[%s2084_s15 + $0x1d0] sm:$0xff]  ;;  %v1107_v31 = vpack.c.bf16 %v1075_v28, %v1071_v27  ;;  %v983_v35 = vld [vmem:[#allocation2] sm:$0xff]  ;;  %v984_v39 = vld [vmem:[#allocation2 + $0x8] sm:$0xff] }
  0xc1   : > { %v1077_v30 = vld [vmem:[%s2084_s15 + $0x1f0] sm:$0xff]  ;;  %v986_v47 = vld [vmem:[#allocation2 + $0x18] sm:$0xff]  ;;  %v987_v55 = vld [vmem:[#allocation2 + $0x20] sm:$0xff] }
  0xc2   : > { %v1109_v32 = vpack.c.bf16 %v1077_v30, %v1073_v29  ;;  %v985_v43 = vld [vmem:[#allocation2 + $0x10] sm:$0xff]  ;;  %v988_v59 = vld [vmem:[#allocation2 + $0x28] sm:$0xff]  ;;  %v990_v3 = vld [vmem:[#allocation2 + $0x38] sm:$0xff] }
  0xc3   : > { %v989_v63 = vld [vmem:[#allocation2 + $0x30] sm:$0xff]  ;;  %v991_v11 = vld [vmem:[#allocation2 + $0x40] sm:$0xff]  ;;  %v992_v15 = vld [vmem:[#allocation2 + $0x48] sm:$0xff] }
  0xc4   : > { %1228 = vmatmul.mubr.bf16.gmra.mrb[8].mxu1 %v1087_v37  ;;  %v993_v19 = vld [vmem:[#allocation2 + $0x50] sm:$0xff]  ;;  %v994_v23 = vld [vmem:[#allocation2 + $0x58] sm:$0xff] }
  0xc5   : > { %1237 = vmatprep.mubr.bf16.mxu1 %v1092_v40  ;;  %1341 = vmatmul.mubr.bf16.gmra.mrb[8].mxu0 %v1089_v41 }
  0xc6   : > { %1350 = vmatprep.mubr.bf16.mxu0 %v1094_v42 }
  0xcc   : > { %1238 = vmatmul.mubr.bf16.gmra.mrb[12].mxu1 %v1091_v49 }
  0xcd   : > { %1247 = vmatprep.mubr.bf16.mxu1 %v1096_v52  ;;  %1351 = vmatmul.mubr.bf16.gmra.mrb[12].mxu0 %v1093_v53 }
  0xce   : > { %1360 = vmatprep.mubr.bf16.mxu0 %v1098_v54 }
  0xd4   : > { %1248 = vmatmul.mubr.bf16.gmra.mrb[16].mxu1 %v1095_v61 }
  0xd5   : > { %1257 = vmatprep.mubr.bf16.mxu1 %v1100_v0  ;;  %1361 = vmatmul.mubr.bf16.gmra.mrb[16].mxu0 %v1097_v1 }
  0xd6   : > { %1370 = vmatprep.mubr.bf16.mxu0 %v1102_v2 }
  0xdc   : > { %1258 = vmatmul.mubr.bf16.gmra.mrb[20].mxu1 %v1099_v9 }
  0xdd   : > { %1267 = vmatprep.mubr.bf16.mxu1 %v1104_v12  ;;  %1371 = vmatmul.mubr.bf16.gmra.mrb[20].mxu0 %v1101_v13 }
  0xde   : > { %1380 = vmatprep.mubr.bf16.mxu0 %v1106_v14 }
  0xe4   : > { %1268 = vmatmul.mubr.bf16.gmra.mrb[24].mxu1 %v1103_v21 }
  0xe5   : > { %1277 = vmatprep.mubr.bf16.mxu1 %v1108_v24  ;;  %1381 = vmatmul.mubr.bf16.gmra.mrb[24].mxu0 %v1105_v25 }
  0xe6   : > { %1390 = vmatprep.mubr.bf16.mxu0 %v1110_v26 }
  0xec   : > { %1278 = vmatmul.mubr.bf16.gmra.mrb[28].mxu1 %v1107_v31  ;;  %v995_v31 = vld [vmem:[#allocation2 + $0x60] sm:$0xff] }
  0xed   : > { %1391 = vmatmul.mubr.bf16.gmra.mrb[28].mxu0 %v1109_v32 }
 0x187   : > { %v1209_v33 = vpop.f32.mrb[0].mxu1 }
 0x188   : > { %v1211_v34 = vpop.f32.mrb[1].mxu1  ;;  %v1322_v36 = vpop.f32.mrb[0].mxu0 }
 0x189   : > { %v1213_v37 = vpop.f32.mrb[2].mxu1  ;;  %v1323_v38 = vadd.f32 %v1322_v36, %v1209_v33  ;;  %v1324_v40 = vpop.f32.mrb[1].mxu0 }
 0x18a   : > { %v1215_v41 = vpop.f32.mrb[3].mxu1  ;;  %v1325_v42 = vadd.f32 %v1324_v40, %v1211_v34  ;;  %v1326_v44 = vpop.f32.mrb[2].mxu0 }
 0x18b   : > { %v1401_v45 = vadd.f32 %v1323_v38, %v983_v35  ;;  %v1327_v46 = vadd.f32 %v1326_v44, %v1213_v37  ;;  %v1328_v48 = vpop.f32.mrb[3].mxu0  ;;  %v996_v35 = vld [vmem:[#allocation2 + $0x68] sm:$0xff] }
 0x18c   : > { %v1402_v49 = vadd.f32 %v1325_v42, %v984_v39  ;;  %v1329_v50 = vadd.f32 %v1328_v48, %v1215_v41  ;;  %v997_v39 = vld [vmem:[#allocation2 + $0x70] sm:$0xff] }
 0x18d   : > { %1433 = vst [vmem:[#allocation2] sm:$0xff] %v1401_v45  ;;  %v1403_v51 = vadd.f32 %v1327_v46, %v985_v43  ;;  %v998_v43 = vld [vmem:[#allocation2 + $0x78] sm:$0xff] }
 0x18e   : > { %1435 = vst.msk [vmem:[#allocation2 + $0x8] sm:$0xff] %vm1434_vm1, %v1402_v49  ;;  %v1404_v52 = vadd.f32 %v1329_v50, %v986_v47 }
 0x18f   : > { %v1219_v53 = vpop.f32.mrb[4].mxu1  ;;  %1436 = vst [vmem:[#allocation2 + $0x10] sm:$0xff] %v1403_v51  ;;  %v999_v51 = vld [vmem:[#allocation2 + $0x80] sm:$0xff] }
 0x190   : > { %v1221_v54 = vpop.f32.mrb[5].mxu1  ;;  %1437 = vst.msk [vmem:[#allocation2 + $0x18] sm:$0xff] %vm1434_vm1, %v1404_v52  ;;  %v1332_v56 = vpop.f32.mrb[4].mxu0 }
 0x191   : > { %v1223_v57 = vpop.f32.mrb[6].mxu1  ;;  %v1333_v58 = vadd.f32 %v1332_v56, %v1219_v53  ;;  %v1334_v60 = vpop.f32.mrb[5].mxu0 }
 0x192   : > { %v1225_v61 = vpop.f32.mrb[7].mxu1  ;;  %v1335_v62 = vadd.f32 %v1334_v60, %v1221_v54  ;;  %v1336_v0 = vpop.f32.mrb[6].mxu0 }
 0x193   : > { %v1405_v1 = vadd.f32 %v1333_v58, %v987_v55  ;;  %v1337_v2 = vadd.f32 %v1336_v0, %v1223_v57  ;;  %v1338_v4 = vpop.f32.mrb[7].mxu0  ;;  %v1000_v55 = vld [vmem:[#allocation2 + $0x88] sm:$0xff] }
 0x194   : > { %v1406_v5 = vadd.f32 %v1335_v62, %v988_v59  ;;  %v1339_v6 = vadd.f32 %v1338_v4, %v1225_v61  ;;  %v1001_v59 = vld [vmem:[#allocation2 + $0x90] sm:$0xff] }
 0x195   : > { %1438 = vst [vmem:[#allocation2 + $0x20] sm:$0xff] %v1405_v1  ;;  %v1407_v7 = vadd.f32 %v1337_v2, %v989_v63  ;;  %v1002_v63 = vld [vmem:[#allocation2 + $0x98] sm:$0xff] }
 0x196   : > { %1439 = vst.msk [vmem:[#allocation2 + $0x28] sm:$0xff] %vm1434_vm1, %v1406_v5  ;;  %v1408_v8 = vadd.f32 %v1339_v6, %v990_v3 }
 0x197   : > { %v1229_v9 = vpop.f32.mrb[8].mxu1  ;;  %1440 = vst [vmem:[#allocation2 + $0x30] sm:$0xff] %v1407_v7  ;;  %v1003_v7 = vld [vmem:[#allocation2 + $0xa0] sm:$0xff] }
 0x198   : > { %v1231_v10 = vpop.f32.mrb[9].mxu1  ;;  %1441 = vst.msk [vmem:[#allocation2 + $0x38] sm:$0xff] %vm1434_vm1, %v1408_v8  ;;  %v1342_v12 = vpop.f32.mrb[8].mxu0 }
 0x199   : > { %v1233_v13 = vpop.f32.mrb[10].mxu1  ;;  %v1343_v14 = vadd.f32 %v1342_v12, %v1229_v9  ;;  %v1344_v16 = vpop.f32.mrb[9].mxu0 }
 0x19a   : > { %v1235_v17 = vpop.f32.mrb[11].mxu1  ;;  %v1345_v18 = vadd.f32 %v1344_v16, %v1231_v10  ;;  %v1346_v20 = vpop.f32.mrb[10].mxu0 }
 0x19b   : > { %v1409_v21 = vadd.f32 %v1343_v14, %v991_v11  ;;  %v1347_v22 = vadd.f32 %v1346_v20, %v1233_v13  ;;  %v1348_v24 = vpop.f32.mrb[11].mxu0  ;;  %v1004_v11 = vld [vmem:[#allocation2 + $0xa8] sm:$0xff] }
 0x19c   : > { %v1410_v25 = vadd.f32 %v1345_v18, %v992_v15  ;;  %v1349_v26 = vadd.f32 %v1348_v24, %v1235_v17  ;;  %v1005_v15 = vld [vmem:[#allocation2 + $0xb0] sm:$0xff] }
 0x19d   : > { %1442 = vst [vmem:[#allocation2 + $0x40] sm:$0xff] %v1409_v21  ;;  %v1411_v27 = vadd.f32 %v1347_v22, %v993_v19  ;;  %v1006_v19 = vld [vmem:[#allocation2 + $0xb8] sm:$0xff] }
 0x19e   : > { %1443 = vst.msk [vmem:[#allocation2 + $0x48] sm:$0xff] %vm1434_vm1, %v1410_v25  ;;  %v1412_v28 = vadd.f32 %v1349_v26, %v994_v23 }
 0x19f   : > { %v1239_v29 = vpop.f32.mrb[12].mxu1  ;;  %1444 = vst [vmem:[#allocation2 + $0x50] sm:$0xff] %v1411_v27  ;;  %v1007_v27 = vld [vmem:[#allocation2 + $0xc0] sm:$0xff] }
 0x1a0   : > { %v1241_v30 = vpop.f32.mrb[13].mxu1  ;;  %1445 = vst.msk [vmem:[#allocation2 + $0x58] sm:$0xff] %vm1434_vm1, %v1412_v28  ;;  %v1352_v32 = vpop.f32.mrb[12].mxu0 }
 0x1a1   : > { %v1243_v33 = vpop.f32.mrb[14].mxu1  ;;  %v1353_v34 = vadd.f32 %v1352_v32, %v1239_v29  ;;  %v1354_v36 = vpop.f32.mrb[13].mxu0 }
 0x1a2   : > { %v1245_v37 = vpop.f32.mrb[15].mxu1  ;;  %v1355_v38 = vadd.f32 %v1354_v36, %v1241_v30  ;;  %v1356_v40 = vpop.f32.mrb[14].mxu0 }
 0x1a3   : > { %v1413_v41 = vadd.f32 %v1353_v34, %v995_v31  ;;  %v1357_v42 = vadd.f32 %v1356_v40, %v1243_v33  ;;  %v1358_v44 = vpop.f32.mrb[15].mxu0  ;;  %v1008_v31 = vld [vmem:[#allocation2 + $0xc8] sm:$0xff] }
 0x1a4   : > { %v1414_v45 = vadd.f32 %v1355_v38, %v996_v35  ;;  %v1359_v46 = vadd.f32 %v1358_v44, %v1245_v37  ;;  %v1009_v35 = vld [vmem:[#allocation2 + $0xd0] sm:$0xff] }
 0x1a5   : > { %1446 = vst [vmem:[#allocation2 + $0x60] sm:$0xff] %v1413_v41  ;;  %v1415_v47 = vadd.f32 %v1357_v42, %v997_v39  ;;  %v1010_v39 = vld [vmem:[#allocation2 + $0xd8] sm:$0xff] }
 0x1a6   : > { %1447 = vst.msk [vmem:[#allocation2 + $0x68] sm:$0xff] %vm1434_vm1, %v1414_v45  ;;  %v1416_v48 = vadd.f32 %v1359_v46, %v998_v43 }
 0x1a7   : > { %v1249_v49 = vpop.f32.mrb[16].mxu1  ;;  %1448 = vst [vmem:[#allocation2 + $0x70] sm:$0xff] %v1415_v47  ;;  %v1011_v47 = vld [vmem:[#allocation2 + $0xe0] sm:$0xff] }
 0x1a8   : > { %v1251_v50 = vpop.f32.mrb[17].mxu1  ;;  %1449 = vst.msk [vmem:[#allocation2 + $0x78] sm:$0xff] %vm1434_vm1, %v1416_v48  ;;  %v1362_v52 = vpop.f32.mrb[16].mxu0 }
 0x1a9   : > { %v1253_v53 = vpop.f32.mrb[18].mxu1  ;;  %v1363_v54 = vadd.f32 %v1362_v52, %v1249_v49  ;;  %v1364_v56 = vpop.f32.mrb[17].mxu0 }
 0x1aa   : > { %v1255_v57 = vpop.f32.mrb[19].mxu1  ;;  %v1365_v58 = vadd.f32 %v1364_v56, %v1251_v50  ;;  %v1366_v60 = vpop.f32.mrb[18].mxu0 }
 0x1ab   : > { %v1417_v61 = vadd.f32 %v1363_v54, %v999_v51  ;;  %v1367_v62 = vadd.f32 %v1366_v60, %v1253_v53  ;;  %v1368_v0 = vpop.f32.mrb[19].mxu0  ;;  %v1012_v51 = vld [vmem:[#allocation2 + $0xe8] sm:$0xff] }
 0x1ac   : > { %v1418_v1 = vadd.f32 %v1365_v58, %v1000_v55  ;;  %v1369_v2 = vadd.f32 %v1368_v0, %v1255_v57  ;;  %v1013_v55 = vld [vmem:[#allocation2 + $0xf0] sm:$0xff] }
 0x1ad   : > { %1450 = vst [vmem:[#allocation2 + $0x80] sm:$0xff] %v1417_v61  ;;  %v1419_v3 = vadd.f32 %v1367_v62, %v1001_v59  ;;  %v1014_v59 = vld [vmem:[#allocation2 + $0xf8] sm:$0xff] }
 0x1ae   : > { %1451 = vst.msk [vmem:[#allocation2 + $0x88] sm:$0xff] %vm1434_vm1, %v1418_v1  ;;  %v1420_v4 = vadd.f32 %v1369_v2, %v1002_v63  ;;  %v1470_v1 = vld [vmem:[#allocation2] sm:$0xff] (!%p1699_p13)  ;;  %v1471_v2 = vld [vmem:[#allocation2 + $0x8] sm:$0xff] (!%p1699_p13) }
 0x1af   : > { %v1259_v5 = vpop.f32.mrb[20].mxu1  ;;  %1452 = vst [vmem:[#allocation2 + $0x90] sm:$0xff] %v1419_v3  ;;  %v1472_v3 = vld [vmem:[#allocation2 + $0x10] sm:$0xff] (!%p1699_p13)  ;;  %1502 = vst [vmem:[%s2082_s5] sm:$0xff] (!%p1699_p13), %v1470_v1 }
 0x1b0   : > { %v1261_v6 = vpop.f32.mrb[21].mxu1  ;;  %1453 = vst.msk [vmem:[#allocation2 + $0x98] sm:$0xff] %vm1434_vm1, %v1420_v4  ;;  %v1372_v8 = vpop.f32.mrb[20].mxu0  ;;  %1503 = vst.msk [vmem:[%s2082_s5 + $0x8] sm:$0xff] (!%p1699_p13), %vm1434_vm1, %v1471_v2  ;;  %v1473_v4 = vld [vmem:[#allocation2 + $0x18] sm:$0xff] (!%p1699_p13) }
 0x1b1   : > { %v1263_v9 = vpop.f32.mrb[22].mxu1  ;;  %v1373_v10 = vadd.f32 %v1372_v8, %v1259_v5  ;;  %v1374_v12 = vpop.f32.mrb[21].mxu0  ;;  %1504 = vst [vmem:[%s2082_s5 + $0x10] sm:$0xff] (!%p1699_p13), %v1472_v3  ;;  %v1474_v5 = vld [vmem:[#allocation2 + $0x20] sm:$0xff] (!%p1699_p13)  ;;  %1505 = vst.msk [vmem:[%s2082_s5 + $0x18] sm:$0xff] (!%p1699_p13), %vm1434_vm1, %v1473_v4  ;;  %v1477_v8 = vld [vmem:[#allocation2 + $0x38] sm:$0xff] (!%p1699_p13) }
 0x1b2   : > { %v1265_v13 = vpop.f32.mrb[23].mxu1  ;;  %v1375_v14 = vadd.f32 %v1374_v12, %v1261_v6  ;;  %v1376_v16 = vpop.f32.mrb[22].mxu0  ;;  %v1475_v6 = vld [vmem:[#allocation2 + $0x28] sm:$0xff] (!%p1699_p13)  ;;  %1506 = vst [vmem:[%s2082_s5 + $0x20] sm:$0xff] (!%p1699_p13), %v1474_v5  ;;  %1509 = vst.msk [vmem:[%s2082_s5 + $0x38] sm:$0xff] (!%p1699_p13), %vm1434_vm1, %v1477_v8  ;;  %v1481_v12 = vld [vmem:[#allocation2 + $0x58] sm:$0xff] (!%p1699_p13) }
 0x1b3   : > { %v1421_v17 = vadd.f32 %v1373_v10, %v1003_v7  ;;  %v1377_v18 = vadd.f32 %v1376_v16, %v1263_v9  ;;  %v1378_v20 = vpop.f32.mrb[23].mxu0  ;;  %1507 = vst.msk [vmem:[%s2082_s5 + $0x28] sm:$0xff] (!%p1699_p13), %vm1434_vm1, %v1475_v6  ;;  %v1476_v7 = vld [vmem:[#allocation2 + $0x30] sm:$0xff] (!%p1699_p13)  ;;  %v1478_v9 = vld [vmem:[#allocation2 + $0x40] sm:$0xff] (!%p1699_p13)  ;;  %v1479_v10 = vld [vmem:[#allocation2 + $0x48] sm:$0xff] (!%p1699_p13) }
 0x1b4   : > { %v1422_v21 = vadd.f32 %v1375_v14, %v1004_v11  ;;  %v1379_v22 = vadd.f32 %v1378_v20, %v1265_v13  ;;  %1508 = vst [vmem:[%s2082_s5 + $0x30] sm:$0xff] (!%p1699_p13), %v1476_v7  ;;  %1510 = vst [vmem:[%s2082_s5 + $0x40] sm:$0xff] (!%p1699_p13), %v1478_v9  ;;  %v1480_v11 = vld [vmem:[#allocation2 + $0x50] sm:$0xff] (!%p1699_p13)  ;;  %v1482_v13 = vld [vmem:[#allocation2 + $0x60] sm:$0xff] (!%p1699_p13) }
 0x1b5   : > { %1454 = vst [vmem:[#allocation2 + $0xa0] sm:$0xff] %v1421_v17  ;;  %v1423_v23 = vadd.f32 %v1377_v18, %v1005_v15  ;;  %1511 = vst.msk [vmem:[%s2082_s5 + $0x48] sm:$0xff] (!%p1699_p13), %vm1434_vm1, %v1479_v10  ;;  %v1483_v14 = vld [vmem:[#allocation2 + $0x68] sm:$0xff] (!%p1699_p13)  ;;  %v1484_v15 = vld [vmem:[#allocation2 + $0x70] sm:$0xff] (!%p1699_p13) }
 0x1b6   : > { %1455 = vst.msk [vmem:[#allocation2 + $0xa8] sm:$0xff] %vm1434_vm1, %v1422_v21  ;;  %v1424_v24 = vadd.f32 %v1379_v22, %v1006_v19  ;;  %1512 = vst [vmem:[%s2082_s5 + $0x50] sm:$0xff] (!%p1699_p13), %v1480_v11  ;;  %v1485_v16 = vld [vmem:[#allocation2 + $0x78] sm:$0xff] (!%p1699_p13)  ;;  %v1486_v17 = vld [vmem:[#allocation2 + $0x80] sm:$0xff] (!%p1699_p13) }
 0x1b7   : > { %v1269_v25 = vpop.f32.mrb[24].mxu1  ;;  %1456 = vst [vmem:[#allocation2 + $0xb0] sm:$0xff] %v1423_v23  ;;  %1513 = vst.msk [vmem:[%s2082_s5 + $0x58] sm:$0xff] (!%p1699_p13), %vm1434_vm1, %v1481_v12  ;;  %v1487_v18 = vld [vmem:[#allocation2 + $0x88] sm:$0xff] (!%p1699_p13)  ;;  %v1488_v19 = vld [vmem:[#allocation2 + $0x90] sm:$0xff] (!%p1699_p13) }
 0x1b8   : > { %v1271_v26 = vpop.f32.mrb[25].mxu1  ;;  %1457 = vst.msk [vmem:[#allocation2 + $0xb8] sm:$0xff] %vm1434_vm1, %v1424_v24  ;;  %v1382_v28 = vpop.f32.mrb[24].mxu0  ;;  %1514 = vst [vmem:[%s2082_s5 + $0x60] sm:$0xff] (!%p1699_p13), %v1482_v13  ;;  %v1489_v20 = vld [vmem:[#allocation2 + $0x98] sm:$0xff] (!%p1699_p13) }
 0x1b9   : > { %v1273_v29 = vpop.f32.mrb[26].mxu1  ;;  %v1383_v30 = vadd.f32 %v1382_v28, %v1269_v25  ;;  %v1384_v32 = vpop.f32.mrb[25].mxu0  ;;  %1515 = vst.msk [vmem:[%s2082_s5 + $0x68] sm:$0xff] (!%p1699_p13), %vm1434_vm1, %v1483_v14  ;;  %1516 = vst [vmem:[%s2082_s5 + $0x70] sm:$0xff] (!%p1699_p13), %v1484_v15 }
 0x1ba   : > { %v1275_v33 = vpop.f32.mrb[27].mxu1  ;;  %v1385_v34 = vadd.f32 %v1384_v32, %v1271_v26  ;;  %v1386_v36 = vpop.f32.mrb[26].mxu0  ;;  %1517 = vst.msk [vmem:[%s2082_s5 + $0x78] sm:$0xff] (!%p1699_p13), %vm1434_vm1, %v1485_v16  ;;  %1518 = vst [vmem:[%s2082_s5 + $0x80] sm:$0xff] (!%p1699_p13), %v1486_v17 }
 0x1bb   : > { %v1425_v37 = vadd.f32 %v1383_v30, %v1007_v27  ;;  %v1387_v38 = vadd.f32 %v1386_v36, %v1273_v29  ;;  %v1388_v40 = vpop.f32.mrb[27].mxu0  ;;  %1519 = vst.msk [vmem:[%s2082_s5 + $0x88] sm:$0xff] (!%p1699_p13), %vm1434_vm1, %v1487_v18  ;;  %1520 = vst [vmem:[%s2082_s5 + $0x90] sm:$0xff] (!%p1699_p13), %v1488_v19 }
 0x1bc   : > { %v1426_v41 = vadd.f32 %v1385_v34, %v1008_v31  ;;  %v1389_v42 = vadd.f32 %v1388_v40, %v1275_v33  ;;  %v1490_v21 = vld [vmem:[#allocation2 + $0xa0] sm:$0xff] (!%p1699_p13)  ;;  %1521 = vst.msk [vmem:[%s2082_s5 + $0x98] sm:$0xff] (!%p1699_p13), %vm1434_vm1, %v1489_v20 }
 0x1bd   : > { %1458 = vst [vmem:[#allocation2 + $0xc0] sm:$0xff] %v1425_v37  ;;  %v1427_v43 = vadd.f32 %v1387_v38, %v1009_v35  ;;  %1522 = vst [vmem:[%s2082_s5 + $0xa0] sm:$0xff] (!%p1699_p13), %v1490_v21  ;;  %v1491_v22 = vld [vmem:[#allocation2 + $0xa8] sm:$0xff] (!%p1699_p13) }
 0x1be   : > { %1459 = vst.msk [vmem:[#allocation2 + $0xc8] sm:$0xff] %vm1434_vm1, %v1426_v41  ;;  %v1428_v44 = vadd.f32 %v1389_v42, %v1010_v39  ;;  %v1492_v23 = vld [vmem:[#allocation2 + $0xb0] sm:$0xff] (!%p1699_p13)  ;;  %1523 = vst.msk [vmem:[%s2082_s5 + $0xa8] sm:$0xff] (!%p1699_p13), %vm1434_vm1, %v1491_v22 }
 0x1bf   : > { %v1279_v45 = vpop.f32.mrb[28].mxu1  ;;  %1460 = vst [vmem:[#allocation2 + $0xd0] sm:$0xff] %v1427_v43  ;;  %v1493_v24 = vld [vmem:[#allocation2 + $0xb8] sm:$0xff] (!%p1699_p13)  ;;  %1524 = vst [vmem:[%s2082_s5 + $0xb0] sm:$0xff] (!%p1699_p13), %v1492_v23 }
 0x1c0   : > { %v1281_v46 = vpop.f32.mrb[29].mxu1  ;;  %1461 = vst.msk [vmem:[#allocation2 + $0xd8] sm:$0xff] %vm1434_vm1, %v1428_v44  ;;  %v1392_v48 = vpop.f32.mrb[28].mxu0  ;;  %1525 = vst.msk [vmem:[%s2082_s5 + $0xb8] sm:$0xff] (!%p1699_p13), %vm1434_vm1, %v1493_v24 }
 0x1c1   : > { %v1283_v49 = vpop.f32.mrb[30].mxu1  ;;  %v1393_v50 = vadd.f32 %v1392_v48, %v1279_v45  ;;  %v1394_v52 = vpop.f32.mrb[29].mxu0 }
 0x1c2   : > { %v1285_v53 = vpop.f32.mrb[31].mxu1  ;;  %v1395_v54 = vadd.f32 %v1394_v52, %v1281_v46  ;;  %v1396_v56 = vpop.f32.mrb[30].mxu0  ;;  %1469 = sbr.rel (%p1699_p13) target bundleno = 465 (0x1d1), region = 63 }
 0x1c3   : > { %v1429_v57 = vadd.f32 %v1393_v50, %v1011_v47  ;;  %v1397_v58 = vadd.f32 %v1396_v56, %v1283_v49  ;;  %v1398_v60 = vpop.f32.mrb[31].mxu0 }
 0x1c4   : > { %v1430_v61 = vadd.f32 %v1395_v54, %v1012_v51  ;;  %v1399_v62 = vadd.f32 %v1398_v60, %v1285_v53  ;;  %v1494_v25 = vld [vmem:[#allocation2 + $0xc0] sm:$0xff] (!%p1699_p13) }
 0x1c5   : > { %1462 = vst [vmem:[#allocation2 + $0xe0] sm:$0xff] %v1429_v57  ;;  %v1431_v63 = vadd.f32 %v1397_v58, %v1013_v55  ;;  %v1495_v26 = vld [vmem:[#allocation2 + $0xc8] sm:$0xff] (!%p1699_p13)  ;;  %1526 = vst [vmem:[%s2082_s5 + $0xc0] sm:$0xff] (!%p1699_p13), %v1494_v25 }
 0x1c6   : > { %1463 = vst.msk [vmem:[#allocation2 + $0xe8] sm:$0xff] %vm1434_vm1, %v1430_v61  ;;  %v1432_v0 = vadd.f32 %v1399_v62, %v1014_v59  ;;  %v1496_v27 = vld [vmem:[#allocation2 + $0xd0] sm:$0xff] (!%p1699_p13)  ;;  %1527 = vst.msk [vmem:[%s2082_s5 + $0xc8] sm:$0xff] (!%p1699_p13), %vm1434_vm1, %v1495_v26 }
 0x1c7   : > { %1464 = vst [vmem:[#allocation2 + $0xf0] sm:$0xff] %v1431_v63  ;;  %1528 = vst [vmem:[%s2082_s5 + $0xd0] sm:$0xff] (!%p1699_p13), %v1496_v27  ;;  %v1497_v28 = vld [vmem:[#allocation2 + $0xd8] sm:$0xff] (!%p1699_p13) }
 0x1c8   : > { %1465 = vst.msk [vmem:[#allocation2 + $0xf8] sm:$0xff] %vm1434_vm1, %v1432_v0  ;;  %1529 = vst.msk [vmem:[%s2082_s5 + $0xd8] sm:$0xff] (!%p1699_p13), %vm1434_vm1, %v1497_v28 }
 0x1cc   : > { %v1498_v29 = vld [vmem:[#allocation2 + $0xe0] sm:$0xff] }
 0x1cd   : > { %v1499_v30 = vld [vmem:[#allocation2 + $0xe8] sm:$0xff]  ;;  %1530 = vst [vmem:[%s2082_s5 + $0xe0] sm:$0xff] %v1498_v29 }
 0x1ce   : > { %1531 = vst.msk [vmem:[%s2082_s5 + $0xe8] sm:$0xff] %vm1434_vm1, %v1499_v30  ;;  %v1500_v31 = vld [vmem:[#allocation2 + $0xf0] sm:$0xff] }
 0x1cf   : > { %v1501_v32 = vld [vmem:[#allocation2 + $0xf8] sm:$0xff]  ;;  %1532 = vst [vmem:[%s2082_s5 + $0xf0] sm:$0xff] %v1500_v31 }
 0x1d0   : > { %1533 = vst.msk [vmem:[%s2082_s5 + $0xf8] sm:$0xff] %vm1434_vm1, %v1501_v32 }
 0x1d1 PF: > { %s13_s18 = sadd.s32 1, %s1849_s18   ;;  %s2513_s12 = smov %s1829_s13 }
 0x1d2   : > { %p10_p0 = scmp.ge.s32.totalorder %s13_s18, 6   ;;  %s2514_s13 = smov %s1923_s25 }
 0x1d3   : > { %s2515_s14 = smov %s1841_s16  ;;  %s2516_s15 = smov %s1845_s17 }
 0x1d4   : > { %s2517_s16 = smov %s2520_s19  ;;  %s2518_s17 = smov %s2524_s20 }
 0x1d5   :  { %12 = sbr.rel (!%p10_p0) target bundleno = 4 (0x4), region = 104 }

</bundles_post_ra>
